<compile_context>
chip_gen: v7x
topology: tpu7x:2x2x1
jax: 0.10.0
libtpu: 0.0.40
codegen_flags: <defaults>
</compile_context>

<pallas_src>
import jax
import jax.numpy as jnp
from jax.experimental import pallas as pl
from jax.experimental.pallas import tpu as pltpu


# --------------------------------------------------------------------------
# small helpers
# --------------------------------------------------------------------------
def _round_up(x, m):
    return ((x + m - 1) // m) * m


def _largest_divisor_le(n, cap):
    cap = max(1, min(n, cap))
    for d in range(cap, 0, -1):
        if n % d == 0:
            return d
    return 1


def _sigmoid(x):
    # one EUP op per call (tanh), instead of exp + divide
    return 0.5 * jnp.tanh(0.5 * x) + 0.5


def _tpu_generation():
    """Best-effort TPU generation from device_kind; only affects tiling."""
    try:
        kind = jax.devices()[0].device_kind.lower()
    except Exception:
        return 6
    for g in (7, 6, 5, 4, 3):
        if str(g) in kind:
            return g
    return 6


def _choose_t_chunk(T, b_block, d_in, Hp, budget):
    """Largest divisor-of-T chunk whose double-buffered footprint fits budget."""
    if T <= 1:
        return 1
    cap = max(1, min(32, T // 2))
    for tc in range(cap, 0, -1):
        if T % tc:
            continue
        fp = (2 * tc * b_block * d_in * 2          # x blocks (bf16, 2 bufs)
              + 2 * tc * b_block * Hp * 2          # out blocks (bf16, 2 bufs)
              + 4 * 2 * b_block * Hp * 4           # h0, c0, hT, cT blocks (f32)
              + 2 * (d_in + Hp) * 4 * Hp * 2       # W_ih + W_hh (bf16, 2 bufs)
              + 2 * 4 * Hp * 4                     # bias
              + tc * b_block * 4 * Hp * 4)         # gates_x VMEM scratch
        if fp <= budget:
            return tc
    return 1


def _choose_v_block(Vp, Hp, Bp, budget):
    """Widest lane-dense output tile for the final linear that fits VMEM."""
    nblk = Vp // 128
    cap = min(nblk, 16)            # up to 2048 lanes
    for nb in range(cap, 0, -1):
        if nblk % nb:
            continue
        vb = 128 * nb
        fp = (2 * Hp * vb * 2      # weight blocks (bf16, 2 bufs)
              + 2 * Bp * vb * 4    # output blocks (f32, 2 bufs)
              + 2 * Bp * Hp * 2    # x blocks (bf16, 2 bufs)
              + 2 * vb * 4)        # bias blocks
        if fp <= budget:
            return vb
    return 128


# --------------------------------------------------------------------------
# Pallas kernels
# --------------------------------------------------------------------------
def _lstm_chunk_body(x_ref, h0_ref, c0_ref, wih_ref, whh_ref, b_ref,
                     hT_ref, cT_ref, gx_ref, out_ref=None):
    """One LSTM layer over one (batch-block, time-chunk) grid cell.

    x_ref:   (Tc, Bb, D)      bf16 time-chunk of the input (time-major)
    h0/c0:   (Bb, Hp)         f32 initial state for this batch block
    wih_ref: (D, 4*Hp)        bf16 input weights (gate-padded, pre-transposed)
    whh_ref: (Hp, 4*Hp)       bf16 recurrent weights
    b_ref:   (1, 4*Hp)        f32 combined bias
    hT/cT:   (Bb, Hp)         f32 state; VMEM-resident across the time axis,
                              doubles as the cross-chunk carry
    gx_ref:  (Tc*Bb, 4*Hp)    f32 VMEM scratch for the hoisted input projection
    out_ref: (Tc, Bb, Hp)     bf16 per-step hidden states (None for last layer)
    """
    t_blk = pl.program_id(1)
    Tc, Bb, D = x_ref.shape
    Hp = h0_ref.shape[1]

    # First chunk of this batch block: seed the resident carry blocks.
    @pl.when(t_blk == 0)
    def _():
        hT_ref[...] = h0_ref[...]
        cT_ref[...] = c0_ref[...]

    # Hoisted input projection (+ bias) for the whole chunk: one MXU matmul,
    # written straight to VMEM scratch so it never lives (and spills) in vregs.
    x2d = x_ref[...].reshape(Tc * Bb, D)
    gx_ref[...] = (jnp.dot(x2d, wih_ref[...],
                           preferred_element_type=jnp.float32)
                   + b_ref[...])

    whh = whh_ref[...]                                   # bf16, hoisted load

    # Two independent batch sub-chains per step (when Bb allows it) so the
    # scheduler can overlap one chain's EUP/VPU work with the other's MXU fill.
    n_sub = 2 if (Bb >= 16 and Bb % 16 == 0) else 1
    half = Bb // n_sub

    hs = [hT_ref[pl.ds(s * half, half), :] for s in range(n_sub)]   # f32
    cs = [cT_ref[pl.ds(s * half, half), :] for s in range(n_sub)]   # f32

    # Static chunk length -> fully unrolled recurrence; only the small
    # (half, Hp) @ (Hp, 4Hp) recurrent matmul sits on the serial critical path.
    for t in range(Tc):
        for s in range(n_sub):
            gates = (gx_ref[pl.ds(t * Bb + s * half, half), :]
                     + jnp.dot(hs[s].astype(jnp.bfloat16), whh,
                               preferred_element_type=jnp.float32))  # (half,4Hp)
            ifo = _sigmoid(gates[:, :3 * Hp])            # i|f|o in one EUP pass
            g = jnp.tanh(gates[:, 3 * Hp:])
            i_g = ifo[:, 0 * Hp:1 * Hp]
            f_g = ifo[:, 1 * Hp:2 * Hp]
            o_g = ifo[:, 2 * Hp:3 * Hp]
            cs[s] = f_g * cs[s] + i_g * g
            hs[s] = o_g * jnp.tanh(cs[s])
            if out_ref is not None:
                out_ref[t, pl.ds(s * half, half), :] = hs[s].astype(out_ref.dtype)

    # Write the carry back into the resident output blocks (next chunk reads it).
    for s in range(n_sub):
        hT_ref[pl.ds(s * half, half), :] = hs[s]
        cT_ref[pl.ds(s * half, half), :] = cs[s]


def lstm_layer_kernel_seq(x_ref, h0_ref, c0_ref, wih_ref, whh_ref, b_ref,
                          out_ref, hT_ref, cT_ref, gx_ref):
    _lstm_chunk_body(x_ref, h0_ref, c0_ref, wih_ref, whh_ref, b_ref,
                     hT_ref, cT_ref, gx_ref, out_ref=out_ref)


def lstm_layer_kernel_last(x_ref, h0_ref, c0_ref, wih_ref, whh_ref, b_ref,
                           hT_ref, cT_ref, gx_ref):
    # Last layer: only h_T / c_T are consumed, skip the per-step HBM writeback.
    _lstm_chunk_body(x_ref, h0_ref, c0_ref, wih_ref, whh_ref, b_ref,
                     hT_ref, cT_ref, gx_ref, out_ref=None)


def linear_kernel(x_ref, w_ref, b_ref, o_ref):
    """o = x @ w + b.  x: (Bp, Hp) bf16, w: (Hp, Vb) bf16, b: (1, Vb), o: (Bp, Vb)."""
    o_ref[...] = (jnp.dot(x_ref[...], w_ref[...],
                          preferred_element_type=jnp.float32)
                  + b_ref[...])


# --------------------------------------------------------------------------
# Wrappers
# --------------------------------------------------------------------------
def run_lstm_layer(x_tm, h0, c0, w_ih_t, w_hh_t, bias, *, t_chunk, b_block,
                   emit_seq, vmem_limit):
    T, Bp, D = x_tm.shape
    Hp = h0.shape[1]
    n_t = T // t_chunk
    n_b = Bp // b_block

    if emit_seq:
        kernel = lstm_layer_kernel_seq
        out_shape = (
            jax.ShapeDtypeStruct((T, Bp, Hp), jnp.bfloat16),   # per-step h
            jax.ShapeDtypeStruct((Bp, Hp), jnp.float32),       # h_T
            jax.ShapeDtypeStruct((Bp, Hp), jnp.float32),       # c_T
        )
        out_specs = (
            pl.BlockSpec((t_chunk, b_block, Hp), lambda b, t: (t, b, 0)),
            pl.BlockSpec((b_block, Hp), lambda b, t: (b, 0)),
            pl.BlockSpec((b_block, Hp), lambda b, t: (b, 0)),
        )
    else:
        kernel = lstm_layer_kernel_last
        out_shape = (
            jax.ShapeDtypeStruct((Bp, Hp), jnp.float32),       # h_T
            jax.ShapeDtypeStruct((Bp, Hp), jnp.float32),       # c_T
        )
        out_specs = (
            pl.BlockSpec((b_block, Hp), lambda b, t: (b, 0)),
            pl.BlockSpec((b_block, Hp), lambda b, t: (b, 0)),
        )

    return pl.pallas_call(
        kernel,
        out_shape=out_shape,
        grid_spec=pltpu.PrefetchScalarGridSpec(
            num_scalar_prefetch=0,
            grid=(n_b, n_t),
            in_specs=[
                pl.BlockSpec((t_chunk, b_block, D), lambda b, t: (t, b, 0)),
                pl.BlockSpec((b_block, Hp), lambda b, t: (b, 0)),
                pl.BlockSpec((b_block, Hp), lambda b, t: (b, 0)),
                pl.BlockSpec((D, 4 * Hp), lambda b, t: (0, 0)),
                pl.BlockSpec((Hp, 4 * Hp), lambda b, t: (0, 0)),
                pl.BlockSpec((1, 4 * Hp), lambda b, t: (0, 0)),
            ],
            out_specs=out_specs,
            scratch_shapes=[
                pltpu.VMEM((t_chunk * b_block, 4 * Hp), jnp.float32),  # gates_x
            ],
        ),
        compiler_params=pltpu.CompilerParams(
            dimension_semantics=("parallel", "arbitrary"),
            vmem_limit_bytes=vmem_limit,
        ),
    )(x_tm, h0, c0, w_ih_t, w_hh_t, bias)


def run_linear(x, w_t, b, *, v_block, vmem_limit):
    Bp, Hp = x.shape
    Vp = w_t.shape[1]
    n_v = Vp // v_block
    return pl.pallas_call(
        linear_kernel,
        out_shape=jax.ShapeDtypeStruct((Bp, Vp), jnp.float32),
        grid_spec=pltpu.PrefetchScalarGridSpec(
            num_scalar_prefetch=0,
            grid=(n_v,),
            in_specs=[
                pl.BlockSpec((Bp, Hp), lambda j: (0, 0)),
                pl.BlockSpec((Hp, v_block), lambda j: (0, j)),
                pl.BlockSpec((1, v_block), lambda j: (0, j)),
            ],
            out_specs=pl.BlockSpec((Bp, v_block), lambda j: (0, j)),
        ),
        compiler_params=pltpu.CompilerParams(
            dimension_semantics=("arbitrary",),
            vmem_limit_bytes=vmem_limit,
        ),
    )(x, w_t, b)


# --------------------------------------------------------------------------
# Parameter construction (deterministic, PyTorch-style init), gate-padded pack
# --------------------------------------------------------------------------
_GATE_ORDER = (0, 1, 3, 2)   # PyTorch rows i,f,g,o  ->  packed i,f,o,g


def _pack_gate_weight(w, hidden, hidden_pad, in_dim, in_pad):
    """(4H, in) PyTorch weight -> (in_pad, 4*Hp) bf16, gates i|f|o|g each Hp wide."""
    w4 = w.reshape(4, hidden, in_dim)[jnp.array(_GATE_ORDER)]
    w4 = jnp.pad(w4, ((0, 0), (0, hidden_pad - hidden), (0, in_pad - in_dim)))
    return w4.reshape(4 * hidden_pad, in_pad).T.astype(jnp.bfloat16)


def _pack_gate_bias(b, hidden, hidden_pad):
    b4 = b.reshape(4, hidden)[jnp.array(_GATE_ORDER)]
    b4 = jnp.pad(b4, ((0, 0), (0, hidden_pad - hidden)))
    return b4.reshape(1, 4 * hidden_pad).astype(jnp.float32)


def init_params(key, input_size, hidden_size, num_layers, vocab_size):
    Hp = _round_up(hidden_size, 128)
    Vp = _round_up(vocab_size, 128)

    params = {}
    key, sub = jax.random.split(key)
    # nn.Embedding default: N(0, 1)
    params["embedding"] = jax.random.normal(
        sub, (vocab_size, input_size), dtype=jnp.float32)

    k = 1.0 / jnp.sqrt(hidden_size)
    layers = []
    for layer in range(num_layers):
        in_dim = input_size if layer == 0 else hidden_size
        in_pad = input_size if layer == 0 else Hp
        key, k1, k2, k3, k4 = jax.random.split(key, 5)
        w_ih = jax.random.uniform(k1, (4 * hidden_size, in_dim),
                                  minval=-k, maxval=k, dtype=jnp.float32)
        w_hh = jax.random.uniform(k2, (4 * hidden_size, hidden_size),
                                  minval=-k, maxval=k, dtype=jnp.float32)
        b_ih = jax.random.uniform(k3, (4 * hidden_size,),
                                  minval=-k, maxval=k, dtype=jnp.float32)
        b_hh = jax.random.uniform(k4, (4 * hidden_size,),
                                  minval=-k, maxval=k, dtype=jnp.float32)
        layers.append({
            "w_ih_t": _pack_gate_weight(w_ih, hidden_size, Hp, in_dim, in_pad),
            "w_hh_t": _pack_gate_weight(w_hh, hidden_size, Hp, hidden_size, Hp),
            "bias": _pack_gate_bias(b_ih + b_hh, hidden_size, Hp),
        })
    params["lstm"] = layers

    kl = 1.0 / jnp.sqrt(hidden_size)
    key, k1, k2 = jax.random.split(key, 3)
    w_out = jax.random.uniform(k1, (vocab_size, hidden_size),
                               minval=-kl, maxval=kl, dtype=jnp.float32)
    b_out = jax.random.uniform(k2, (vocab_size,),
                               minval=-kl, maxval=kl, dtype=jnp.float32)
    w_out_p = jnp.pad(w_out, ((0, Vp - vocab_size), (0, Hp - hidden_size)))
    params["w_out_t"] = w_out_p.T.astype(jnp.bfloat16)          # (Hp, Vp)
    params["b_out"] = jnp.pad(b_out, (0, Vp - vocab_size)).reshape(1, Vp)
    return params


# --------------------------------------------------------------------------
# Full forward pass (mirrors LSTM.forward)
# --------------------------------------------------------------------------
def lstm_forward(params, x_ids, num_layers, hidden_size, vocab_size, hc_0=None):
    B, T = x_ids.shape
    H = hidden_size
    Hp = _round_up(H, 128)
    Bp = _round_up(B, 16)          # bf16 sublane pack
    V = vocab_size

    gen = _tpu_generation()
    budget = (48 if gen >= 7 else 64) * 1024 * 1024   # leave headroom on v7x

    # Embedding lookup (glue, plain-JAX gather).
    x = jnp.take(params["embedding"], x_ids, axis=0)            # (B, T, D) f32

    # Initial state handling (matches the PyTorch shape-check fallback).
    expected = (num_layers, B, H)
    if hc_0 is not None and hc_0[0].shape == expected:
        h_0, c_0 = hc_0
    else:
        h_0 = jnp.zeros(expected, dtype=jnp.float32)
        c_0 = jnp.zeros(expected, dtype=jnp.float32)

    # Pad initial state to (L, Bp, Hp); padded lanes stay exactly zero.
    h_0p = jnp.pad(h_0.astype(jnp.float32), ((0, 0), (0, Bp - B), (0, Hp - H)))
    c_0p = jnp.pad(c_0.astype(jnp.float32), ((0, 0), (0, Bp - B), (0, Hp - H)))

    # Time-major, batch-padded, bf16 for the MXU.
    x_tm = jnp.transpose(x, (1, 0, 2)).astype(jnp.float32)      # (T, B, D)
    x_tm = jnp.pad(x_tm, ((0, 0), (0, Bp - B), (0, 0))).astype(jnp.bfloat16)
    D = x_tm.shape[2]

    # Batch block: only split across cores on v7x (2 TCs) and only when each
    # half keeps a reasonably tall M for the recurrent matmul; on v5e/v6e the
    # "parallel" batch axis would just be a serial loop on a single TC.
    if gen >= 7 and Bp % 32 == 0 and (Bp // 2) >= 64:
        b_block = Bp // 2
    else:
        b_block = Bp

    # Time chunk and output-linear tile derived under the VMEM budget.
    d_worst = max(D, Hp)
    t_chunk = _choose_t_chunk(T, b_block, d_worst, Hp, int(budget * 0.75))
    Vp = params["w_out_t"].shape[1]
    v_block = _choose_v_block(Vp, Hp, Bp, int(budget * 0.75))

    layer_in = x_tm
    h_finals, c_finals = [], []
    hT_last = None
    for layer in range(num_layers):
        p = params["lstm"][layer]
        emit_seq = layer < num_layers - 1   # last layer: no per-step writeback
        res = run_lstm_layer(layer_in, h_0p[layer], c_0p[layer],
                             p["w_ih_t"], p["w_hh_t"], p["bias"],
                             t_chunk=t_chunk, b_block=b_block,
                             emit_seq=emit_seq, vmem_limit=budget)
        # TODO(synk): inter-layer dropout (only active when num_layers > 2 and
        # training) is omitted — inference semantics.
        if emit_seq:
            layer_out, h_T, c_T = res
            layer_in = layer_out
        else:
            h_T, c_T = res
            hT_last = h_T
        h_finals.append(h_T)
        c_finals.append(c_T)

    h_n = jnp.stack(h_finals, axis=0)[:, :B, :H]                # (L, B, H)
    c_n = jnp.stack(c_finals, axis=0)[:, :B, :H]                # (L, B, H)

    # out[:, -1, :] of the top layer is exactly its final hidden state h_T.
    last_h = hT_last.astype(jnp.bfloat16)                       # (Bp, Hp)
    logits_p = run_linear(last_h, params["w_out_t"], params["b_out"],
                          v_block=v_block, vmem_limit=budget)   # (Bp, Vp)
    logits = logits_p[:B, :V][:, None, :]                       # unsqueeze(dim=1)
    return logits, (h_n, c_n)


# --------------------------------------------------------------------------
if __name__ == "__main__":
    input_size = 16
    hidden_size = 32
    num_layers = 2
    vocab_size = 50
    batch = 2
    seq_len = 8

    key = jax.random.PRNGKey(0)
    key, pkey, xkey = jax.random.split(key, 3)

    params = init_params(pkey, input_size, hidden_size, num_layers, vocab_size)
    x_ids = jax.random.randint(xkey, (batch, seq_len), 0, vocab_size,
                               dtype=jnp.int32)

    out, (h_n, c_n) = lstm_forward(params, x_ids, num_layers, hidden_size,
                                   vocab_size)
    jax.block_until_ready((out, h_n, c_n))

    assert out.shape == (batch, 1, vocab_size), out.shape
    assert h_n.shape == (num_layers, batch, hidden_size), h_n.shape
    assert c_n.shape == (num_layers, batch, hidden_size), c_n.shape
    print("KERNEL_OK")
</pallas_src>

<mosaic_0001>
module attributes {stable_mosaic.version = 11 : i64} {
  func.func @lstm_layer_kernel_seq(%arg0: i32, %arg1: i32, %arg2: memref<4x16x16xbf16, #tpu.memory_space<vmem>>, %arg3: memref<16x128xf32, #tpu.memory_space<vmem>>, %arg4: memref<16x128xf32, #tpu.memory_space<vmem>>, %arg5: memref<16x512xbf16, #tpu.memory_space<vmem>>, %arg6: memref<128x512xbf16, #tpu.memory_space<vmem>>, %arg7: memref<1x512xf32, #tpu.memory_space<vmem>>, %arg8: memref<4x16x128xbf16, #tpu.memory_space<vmem>>, %arg9: memref<16x128xf32, #tpu.memory_space<vmem>>, %arg10: memref<16x128xf32, #tpu.memory_space<vmem>>, %arg11: memref<64x512xf32, #tpu.memory_space<vmem>>) attributes {dimension_semantics = [#tpu.dimension_semantics<parallel>, #tpu.dimension_semantics<arbitrary>], iteration_bounds = array<i64: 1, 2>, scalar_prefetch = 0 : i64, scratch_operands = 1 : i64, tpu.core_type = #tpu.core_type<tc>, window_params = [{transform_indices = @transform_0, window_bounds = array<i64: 4, 16, 16>}, {transform_indices = @transform_1, window_bounds = array<i64: 16, 128>}, {transform_indices = @transform_2, window_bounds = array<i64: 16, 128>}, {pipeline_mode = #tpu.pipeline_mode<synchronous>, transform_indices = @transform_3, window_bounds = array<i64: 16, 512>}, {pipeline_mode = #tpu.pipeline_mode<synchronous>, transform_indices = @transform_4, window_bounds = array<i64: 128, 512>}, {pipeline_mode = #tpu.pipeline_mode<synchronous>, transform_indices = @transform_5, window_bounds = array<i64: 1, 512>}, {transform_indices = @transform_6, window_bounds = array<i64: 4, 16, 128>}, {transform_indices = @transform_7, window_bounds = array<i64: 16, 128>}, {transform_indices = @transform_8, window_bounds = array<i64: 16, 128>}]} {
    %c0_i32 = arith.constant 0 : i32
    %0 = arith.cmpi eq, %arg1, %c0_i32 : i32
    %1 = arith.extui %0 : i1 to i32
    %c0_i32_0 = arith.constant 0 : i32
    %2 = arith.cmpi ne, %1, %c0_i32_0 : i32
    scf.if %2 {
      %c0_89 = arith.constant 0 : index
      %c0_90 = arith.constant 0 : index
      %228 = vector.load %arg3[%c0_89, %c0_90] : memref<16x128xf32, #tpu.memory_space<vmem>>, vector<16x128xf32>
      %c0_91 = arith.constant 0 : index
      %c0_92 = arith.constant 0 : index
      %229 = vector.load %arg9[%c0_91, %c0_92] : memref<16x128xf32, #tpu.memory_space<vmem>>, vector<16x128xf32>
      tpu.vector_store %arg9[%c0_91, %c0_92], %228 {strides = array<i32>} : memref<16x128xf32, #tpu.memory_space<vmem>>, vector<16x128xf32>,
      %c0_93 = arith.constant 0 : index
      %c0_94 = arith.constant 0 : index
      %230 = vector.load %arg4[%c0_93, %c0_94] : memref<16x128xf32, #tpu.memory_space<vmem>>, vector<16x128xf32>
      %c0_95 = arith.constant 0 : index
      %c0_96 = arith.constant 0 : index
      %231 = vector.load %arg10[%c0_95, %c0_96] : memref<16x128xf32, #tpu.memory_space<vmem>>, vector<16x128xf32>
      tpu.vector_store %arg10[%c0_95, %c0_96], %230 {strides = array<i32>} : memref<16x128xf32, #tpu.memory_space<vmem>>, vector<16x128xf32>,
    } else {
    }
    %c0 = arith.constant 0 : index
    %c0_1 = arith.constant 0 : index
    %c0_2 = arith.constant 0 : index
    %3 = vector.load %arg2[%c0, %c0_1, %c0_2] : memref<4x16x16xbf16, #tpu.memory_space<vmem>>, vector<4x16x16xbf16>
    %4 = vector.shape_cast %3 : vector<4x16x16xbf16> to vector<64x16xbf16>
    %c0_3 = arith.constant 0 : index
    %c0_4 = arith.constant 0 : index
    %5 = vector.load %arg5[%c0_3, %c0_4] : memref<16x512xbf16, #tpu.memory_space<vmem>>, vector<16x512xbf16>
    %cst = arith.constant dense<0.000000e+00> : vector<64x512xf32>
    %6 = tpu.matmul %4, %5, %cst {dimension_numbers = #tpu.dot_dimension_numbers<[1], [0], [0], [1], [0, 0, 1, 1], [], []>} : vector<64x16xbf16>, vector<16x512xbf16>, vector<64x512xf32> -> vector<64x512xf32>
    %c0_5 = arith.constant 0 : index
    %c0_6 = arith.constant 0 : index
    %7 = vector.load %arg7[%c0_5, %c0_6] : memref<1x512xf32, #tpu.memory_space<vmem>>, vector<1x512xf32>
    %8 = vector.broadcast %7 : vector<1x512xf32> to vector<64x512xf32>
    %9 = arith.addf %6, %8 : vector<64x512xf32>
    %c0_7 = arith.constant 0 : index
    %c0_8 = arith.constant 0 : index
    %10 = vector.load %arg11[%c0_7, %c0_8] : memref<64x512xf32, #tpu.memory_space<vmem>>, vector<64x512xf32>
    tpu.vector_store %arg11[%c0_7, %c0_8], %9 {strides = array<i32>} : memref<64x512xf32, #tpu.memory_space<vmem>>, vector<64x512xf32>,
    %c0_9 = arith.constant 0 : index
    %c0_10 = arith.constant 0 : index
    %11 = vector.load %arg6[%c0_9, %c0_10] : memref<128x512xbf16, #tpu.memory_space<vmem>>, vector<128x512xbf16>
    %c0_11 = arith.constant 0 : index
    %c0_12 = arith.constant 0 : index
    %12 = vector.load %arg9[%c0_11, %c0_12] : memref<16x128xf32, #tpu.memory_space<vmem>>, vector<8x128xf32>
    %c8 = arith.constant 8 : index
    %c0_13 = arith.constant 0 : index
    %13 = vector.load %arg9[%c8, %c0_13] : memref<16x128xf32, #tpu.memory_space<vmem>>, vector<8x128xf32>
    %c0_14 = arith.constant 0 : index
    %c0_15 = arith.constant 0 : index
    %14 = vector.load %arg10[%c0_14, %c0_15] : memref<16x128xf32, #tpu.memory_space<vmem>>, vector<8x128xf32>
    %c8_16 = arith.constant 8 : index
    %c0_17 = arith.constant 0 : index
    %15 = vector.load %arg10[%c8_16, %c0_17] : memref<16x128xf32, #tpu.memory_space<vmem>>, vector<8x128xf32>
    %c0_18 = arith.constant 0 : index
    %c0_19 = arith.constant 0 : index
    %16 = vector.load %arg11[%c0_18, %c0_19] : memref<64x512xf32, #tpu.memory_space<vmem>>, vector<8x512xf32>
    %17 = arith.truncf %12 : vector<8x128xf32> to vector<8x128xbf16>
    %cst_20 = arith.constant dense<0.000000e+00> : vector<8x512xf32>
    %18 = tpu.matmul %17, %11, %cst_20 {dimension_numbers = #tpu.dot_dimension_numbers<[1], [0], [0], [1], [0, 0, 1, 1], [], []>} : vector<8x128xbf16>, vector<128x512xbf16>, vector<8x512xf32> -> vector<8x512xf32>
    %19 = arith.addf %16, %18 : vector<8x512xf32>
    %20 = vector.extract_strided_slice %19 {offsets = [0, 0], sizes = [8, 384], strides = [1, 1]} : vector<8x512xf32> to vector<8x384xf32>
    %cst_21 = arith.constant 5.000000e-01 : f32
    %21 = vector.broadcast %cst_21 : f32 to vector<8x384xf32>
    %22 = arith.mulf %21, %20 : vector<8x384xf32>
    %23 = math.tanh %22 : vector<8x384xf32>
    %cst_22 = arith.constant 5.000000e-01 : f32
    %24 = vector.broadcast %cst_22 : f32 to vector<8x384xf32>
    %25 = arith.mulf %24, %23 : vector<8x384xf32>
    %cst_23 = arith.constant 5.000000e-01 : f32
    %26 = vector.broadcast %cst_23 : f32 to vector<8x384xf32>
    %27 = arith.addf %25, %26 : vector<8x384xf32>
    %28 = vector.extract_strided_slice %19 {offsets = [0, 384], sizes = [8, 128], strides = [1, 1]} : vector<8x512xf32> to vector<8x128xf32>
    %29 = math.tanh %28 : vector<8x128xf32>
    %30 = vector.extract_strided_slice %27 {offsets = [0, 0], sizes = [8, 128], strides = [1, 1]} : vector<8x384xf32> to vector<8x128xf32>
    %31 = vector.extract_strided_slice %27 {offsets = [0, 128], sizes = [8, 128], strides = [1, 1]} : vector<8x384xf32> to vector<8x128xf32>
    %32 = vector.extract_strided_slice %27 {offsets = [0, 256], sizes = [8, 128], strides = [1, 1]} : vector<8x384xf32> to vector<8x128xf32>
    %33 = arith.mulf %31, %14 : vector<8x128xf32>
    %34 = arith.mulf %30, %29 : vector<8x128xf32>
    %35 = arith.addf %33, %34 : vector<8x128xf32>
    %36 = math.tanh %35 : vector<8x128xf32>
    %37 = arith.mulf %32, %36 : vector<8x128xf32>
    %38 = arith.truncf %37 : vector<8x128xf32> to vector<8x128xbf16>
    %c0_24 = arith.constant 0 : index
    %c0_25 = arith.constant 0 : index
    %c0_26 = arith.constant 0 : index
    %39 = vector.load %arg8[%c0_24, %c0_25, %c0_26] : memref<4x16x128xbf16, #tpu.memory_space<vmem>>, vector<1x8x128xbf16>
    %40 = vector.shape_cast %39 : vector<1x8x128xbf16> to vector<8x128xbf16>
    %41 = vector.shape_cast %38 : vector<8x128xbf16> to vector<1x8x128xbf16>
    tpu.vector_store %arg8[%c0_24, %c0_25, %c0_26], %41 {strides = array<i32>} : memref<4x16x128xbf16, #tpu.memory_space<vmem>>, vector<1x8x128xbf16>,
    %c8_27 = arith.constant 8 : index
    %c0_28 = arith.constant 0 : index
    %42 = vector.load %arg11[%c8_27, %c0_28] : memref<64x512xf32, #tpu.memory_space<vmem>>, vector<8x512xf32>
    %43 = arith.truncf %13 : vector<8x128xf32> to vector<8x128xbf16>
    %cst_29 = arith.constant dense<0.000000e+00> : vector<8x512xf32>
    %44 = tpu.matmul %43, %11, %cst_29 {dimension_numbers = #tpu.dot_dimension_numbers<[1], [0], [0], [1], [0, 0, 1, 1], [], []>} : vector<8x128xbf16>, vector<128x512xbf16>, vector<8x512xf32> -> vector<8x512xf32>
    %45 = arith.addf %42, %44 : vector<8x512xf32>
    %46 = vector.extract_strided_slice %45 {offsets = [0, 0], sizes = [8, 384], strides = [1, 1]} : vector<8x512xf32> to vector<8x384xf32>
    %cst_30 = arith.constant 5.000000e-01 : f32
    %47 = vector.broadcast %cst_30 : f32 to vector<8x384xf32>
    %48 = arith.mulf %47, %46 : vector<8x384xf32>
    %49 = math.tanh %48 : vector<8x384xf32>
    %cst_31 = arith.constant 5.000000e-01 : f32
    %50 = vector.broadcast %cst_31 : f32 to vector<8x384xf32>
    %51 = arith.mulf %50, %49 : vector<8x384xf32>
    %cst_32 = arith.constant 5.000000e-01 : f32
    %52 = vector.broadcast %cst_32 : f32 to vector<8x384xf32>
    %53 = arith.addf %51, %52 : vector<8x384xf32>
    %54 = vector.extract_strided_slice %45 {offsets = [0, 384], sizes = [8, 128], strides = [1, 1]} : vector<8x512xf32> to vector<8x128xf32>
    %55 = math.tanh %54 : vector<8x128xf32>
    %56 = vector.extract_strided_slice %53 {offsets = [0, 0], sizes = [8, 128], strides = [1, 1]} : vector<8x384xf32> to vector<8x128xf32>
    %57 = vector.extract_strided_slice %53 {offsets = [0, 128], sizes = [8, 128], strides = [1, 1]} : vector<8x384xf32> to vector<8x128xf32>
    %58 = vector.extract_strided_slice %53 {offsets = [0, 256], sizes = [8, 128], strides = [1, 1]} : vector<8x384xf32> to vector<8x128xf32>
    %59 = arith.mulf %57, %15 : vector<8x128xf32>
    %60 = arith.mulf %56, %55 : vector<8x128xf32>
    %61 = arith.addf %59, %60 : vector<8x128xf32>
    %62 = math.tanh %61 : vector<8x128xf32>
    %63 = arith.mulf %58, %62 : vector<8x128xf32>
    %64 = arith.truncf %63 : vector<8x128xf32> to vector<8x128xbf16>
    %c0_33 = arith.constant 0 : index
    %c8_34 = arith.constant 8 : index
    %c0_35 = arith.constant 0 : index
    %65 = vector.load %arg8[%c0_33, %c8_34, %c0_35] : memref<4x16x128xbf16, #tpu.memory_space<vmem>>, vector<1x8x128xbf16>
    %66 = vector.shape_cast %65 : vector<1x8x128xbf16> to vector<8x128xbf16>
    %67 = vector.shape_cast %64 : vector<8x128xbf16> to vector<1x8x128xbf16>
    tpu.vector_store %arg8[%c0_33, %c8_34, %c0_35], %67 {strides = array<i32>} : memref<4x16x128xbf16, #tpu.memory_space<vmem>>, vector<1x8x128xbf16>,
    %c16 = arith.constant 16 : index
    %c0_36 = arith.constant 0 : index
    %68 = vector.load %arg11[%c16, %c0_36] : memref<64x512xf32, #tpu.memory_space<vmem>>, vector<8x512xf32>
    %69 = arith.truncf %37 : vector<8x128xf32> to vector<8x128xbf16>
    %cst_37 = arith.constant dense<0.000000e+00> : vector<8x512xf32>
    %70 = tpu.matmul %69, %11, %cst_37 {dimension_numbers = #tpu.dot_dimension_numbers<[1], [0], [0], [1], [0, 0, 1, 1], [], []>} : vector<8x128xbf16>, vector<128x512xbf16>, vector<8x512xf32> -> vector<8x512xf32>
    %71 = arith.addf %68, %70 : vector<8x512xf32>
    %72 = vector.extract_strided_slice %71 {offsets = [0, 0], sizes = [8, 384], strides = [1, 1]} : vector<8x512xf32> to vector<8x384xf32>
    %cst_38 = arith.constant 5.000000e-01 : f32
    %73 = vector.broadcast %cst_38 : f32 to vector<8x384xf32>
    %74 = arith.mulf %73, %72 : vector<8x384xf32>
    %75 = math.tanh %74 : vector<8x384xf32>
    %cst_39 = arith.constant 5.000000e-01 : f32
    %76 = vector.broadcast %cst_39 : f32 to vector<8x384xf32>
    %77 = arith.mulf %76, %75 : vector<8x384xf32>
    %cst_40 = arith.constant 5.000000e-01 : f32
    %78 = vector.broadcast %cst_40 : f32 to vector<8x384xf32>
    %79 = arith.addf %77, %78 : vector<8x384xf32>
    %80 = vector.extract_strided_slice %71 {offsets = [0, 384], sizes = [8, 128], strides = [1, 1]} : vector<8x512xf32> to vector<8x128xf32>
    %81 = math.tanh %80 : vector<8x128xf32>
    %82 = vector.extract_strided_slice %79 {offsets = [0, 0], sizes = [8, 128], strides = [1, 1]} : vector<8x384xf32> to vector<8x128xf32>
    %83 = vector.extract_strided_slice %79 {offsets = [0, 128], sizes = [8, 128], strides = [1, 1]} : vector<8x384xf32> to vector<8x128xf32>
    %84 = vector.extract_strided_slice %79 {offsets = [0, 256], sizes = [8, 128], strides = [1, 1]} : vector<8x384xf32> to vector<8x128xf32>
    %85 = arith.mulf %83, %35 : vector<8x128xf32>
    %86 = arith.mulf %82, %81 : vector<8x128xf32>
    %87 = arith.addf %85, %86 : vector<8x128xf32>
    %88 = math.tanh %87 : vector<8x128xf32>
    %89 = arith.mulf %84, %88 : vector<8x128xf32>
    %90 = arith.truncf %89 : vector<8x128xf32> to vector<8x128xbf16>
    %c1 = arith.constant 1 : index
    %c0_41 = arith.constant 0 : index
    %c0_42 = arith.constant 0 : index
    %91 = vector.load %arg8[%c1, %c0_41, %c0_42] : memref<4x16x128xbf16, #tpu.memory_space<vmem>>, vector<1x8x128xbf16>
    %92 = vector.shape_cast %91 : vector<1x8x128xbf16> to vector<8x128xbf16>
    %93 = vector.shape_cast %90 : vector<8x128xbf16> to vector<1x8x128xbf16>
    tpu.vector_store %arg8[%c1, %c0_41, %c0_42], %93 {strides = array<i32>} : memref<4x16x128xbf16, #tpu.memory_space<vmem>>, vector<1x8x128xbf16>,
    %c24 = arith.constant 24 : index
    %c0_43 = arith.constant 0 : index
    %94 = vector.load %arg11[%c24, %c0_43] : memref<64x512xf32, #tpu.memory_space<vmem>>, vector<8x512xf32>
    %95 = arith.truncf %63 : vector<8x128xf32> to vector<8x128xbf16>
    %cst_44 = arith.constant dense<0.000000e+00> : vector<8x512xf32>
    %96 = tpu.matmul %95, %11, %cst_44 {dimension_numbers = #tpu.dot_dimension_numbers<[1], [0], [0], [1], [0, 0, 1, 1], [], []>} : vector<8x128xbf16>, vector<128x512xbf16>, vector<8x512xf32> -> vector<8x512xf32>
    %97 = arith.addf %94, %96 : vector<8x512xf32>
    %98 = vector.extract_strided_slice %97 {offsets = [0, 0], sizes = [8, 384], strides = [1, 1]} : vector<8x512xf32> to vector<8x384xf32>
    %cst_45 = arith.constant 5.000000e-01 : f32
    %99 = vector.broadcast %cst_45 : f32 to vector<8x384xf32>
    %100 = arith.mulf %99, %98 : vector<8x384xf32>
    %101 = math.tanh %100 : vector<8x384xf32>
    %cst_46 = arith.constant 5.000000e-01 : f32
    %102 = vector.broadcast %cst_46 : f32 to vector<8x384xf32>
    %103 = arith.mulf %102, %101 : vector<8x384xf32>
    %cst_47 = arith.constant 5.000000e-01 : f32
    %104 = vector.broadcast %cst_47 : f32 to vector<8x384xf32>
    %105 = arith.addf %103, %104 : vector<8x384xf32>
    %106 = vector.extract_strided_slice %97 {offsets = [0, 384], sizes = [8, 128], strides = [1, 1]} : vector<8x512xf32> to vector<8x128xf32>
    %107 = math.tanh %106 : vector<8x128xf32>
    %108 = vector.extract_strided_slice %105 {offsets = [0, 0], sizes = [8, 128], strides = [1, 1]} : vector<8x384xf32> to vector<8x128xf32>
    %109 = vector.extract_strided_slice %105 {offsets = [0, 128], sizes = [8, 128], strides = [1, 1]} : vector<8x384xf32> to vector<8x128xf32>
    %110 = vector.extract_strided_slice %105 {offsets = [0, 256], sizes = [8, 128], strides = [1, 1]} : vector<8x384xf32> to vector<8x128xf32>
    %111 = arith.mulf %109, %61 : vector<8x128xf32>
    %112 = arith.mulf %108, %107 : vector<8x128xf32>
    %113 = arith.addf %111, %112 : vector<8x128xf32>
    %114 = math.tanh %113 : vector<8x128xf32>
    %115 = arith.mulf %110, %114 : vector<8x128xf32>
    %116 = arith.truncf %115 : vector<8x128xf32> to vector<8x128xbf16>
    %c1_48 = arith.constant 1 : index
    %c8_49 = arith.constant 8 : index
    %c0_50 = arith.constant 0 : index
    %117 = vector.load %arg8[%c1_48, %c8_49, %c0_50] : memref<4x16x128xbf16, #tpu.memory_space<vmem>>, vector<1x8x128xbf16>
    %118 = vector.shape_cast %117 : vector<1x8x128xbf16> to vector<8x128xbf16>
    %119 = vector.shape_cast %116 : vector<8x128xbf16> to vector<1x8x128xbf16>
    tpu.vector_store %arg8[%c1_48, %c8_49, %c0_50], %119 {strides = array<i32>} : memref<4x16x128xbf16, #tpu.memory_space<vmem>>, vector<1x8x128xbf16>,
    %c32 = arith.constant 32 : index
    %c0_51 = arith.constant 0 : index
    %120 = vector.load %arg11[%c32, %c0_51] : memref<64x512xf32, #tpu.memory_space<vmem>>, vector<8x512xf32>
    %121 = arith.truncf %89 : vector<8x128xf32> to vector<8x128xbf16>
    %cst_52 = arith.constant dense<0.000000e+00> : vector<8x512xf32>
    %122 = tpu.matmul %121, %11, %cst_52 {dimension_numbers = #tpu.dot_dimension_numbers<[1], [0], [0], [1], [0, 0, 1, 1], [], []>} : vector<8x128xbf16>, vector<128x512xbf16>, vector<8x512xf32> -> vector<8x512xf32>
    %123 = arith.addf %120, %122 : vector<8x512xf32>
    %124 = vector.extract_strided_slice %123 {offsets = [0, 0], sizes = [8, 384], strides = [1, 1]} : vector<8x512xf32> to vector<8x384xf32>
    %cst_53 = arith.constant 5.000000e-01 : f32
    %125 = vector.broadcast %cst_53 : f32 to vector<8x384xf32>
    %126 = arith.mulf %125, %124 : vector<8x384xf32>
    %127 = math.tanh %126 : vector<8x384xf32>
    %cst_54 = arith.constant 5.000000e-01 : f32
    %128 = vector.broadcast %cst_54 : f32 to vector<8x384xf32>
    %129 = arith.mulf %128, %127 : vector<8x384xf32>
    %cst_55 = arith.constant 5.000000e-01 : f32
    %130 = vector.broadcast %cst_55 : f32 to vector<8x384xf32>
    %131 = arith.addf %129, %130 : vector<8x384xf32>
    %132 = vector.extract_strided_slice %123 {offsets = [0, 384], sizes = [8, 128], strides = [1, 1]} : vector<8x512xf32> to vector<8x128xf32>
    %133 = math.tanh %132 : vector<8x128xf32>
    %134 = vector.extract_strided_slice %131 {offsets = [0, 0], sizes = [8, 128], strides = [1, 1]} : vector<8x384xf32> to vector<8x128xf32>
    %135 = vector.extract_strided_slice %131 {offsets = [0, 128], sizes = [8, 128], strides = [1, 1]} : vector<8x384xf32> to vector<8x128xf32>
    %136 = vector.extract_strided_slice %131 {offsets = [0, 256], sizes = [8, 128], strides = [1, 1]} : vector<8x384xf32> to vector<8x128xf32>
    %137 = arith.mulf %135, %87 : vector<8x128xf32>
    %138 = arith.mulf %134, %133 : vector<8x128xf32>
    %139 = arith.addf %137, %138 : vector<8x128xf32>
    %140 = math.tanh %139 : vector<8x128xf32>
    %141 = arith.mulf %136, %140 : vector<8x128xf32>
    %142 = arith.truncf %141 : vector<8x128xf32> to vector<8x128xbf16>
    %c2 = arith.constant 2 : index
    %c0_56 = arith.constant 0 : index
    %c0_57 = arith.constant 0 : index
    %143 = vector.load %arg8[%c2, %c0_56, %c0_57] : memref<4x16x128xbf16, #tpu.memory_space<vmem>>, vector<1x8x128xbf16>
    %144 = vector.shape_cast %143 : vector<1x8x128xbf16> to vector<8x128xbf16>
    %145 = vector.shape_cast %142 : vector<8x128xbf16> to vector<1x8x128xbf16>
    tpu.vector_store %arg8[%c2, %c0_56, %c0_57], %145 {strides = array<i32>} : memref<4x16x128xbf16, #tpu.memory_space<vmem>>, vector<1x8x128xbf16>,
    %c40 = arith.constant 40 : index
    %c0_58 = arith.constant 0 : index
    %146 = vector.load %arg11[%c40, %c0_58] : memref<64x512xf32, #tpu.memory_space<vmem>>, vector<8x512xf32>
    %147 = arith.truncf %115 : vector<8x128xf32> to vector<8x128xbf16>
    %cst_59 = arith.constant dense<0.000000e+00> : vector<8x512xf32>
    %148 = tpu.matmul %147, %11, %cst_59 {dimension_numbers = #tpu.dot_dimension_numbers<[1], [0], [0], [1], [0, 0, 1, 1], [], []>} : vector<8x128xbf16>, vector<128x512xbf16>, vector<8x512xf32> -> vector<8x512xf32>
    %149 = arith.addf %146, %148 : vector<8x512xf32>
    %150 = vector.extract_strided_slice %149 {offsets = [0, 0], sizes = [8, 384], strides = [1, 1]} : vector<8x512xf32> to vector<8x384xf32>
    %cst_60 = arith.constant 5.000000e-01 : f32
    %151 = vector.broadcast %cst_60 : f32 to vector<8x384xf32>
    %152 = arith.mulf %151, %150 : vector<8x384xf32>
    %153 = math.tanh %152 : vector<8x384xf32>
    %cst_61 = arith.constant 5.000000e-01 : f32
    %154 = vector.broadcast %cst_61 : f32 to vector<8x384xf32>
    %155 = arith.mulf %154, %153 : vector<8x384xf32>
    %cst_62 = arith.constant 5.000000e-01 : f32
    %156 = vector.broadcast %cst_62 : f32 to vector<8x384xf32>
    %157 = arith.addf %155, %156 : vector<8x384xf32>
    %158 = vector.extract_strided_slice %149 {offsets = [0, 384], sizes = [8, 128], strides = [1, 1]} : vector<8x512xf32> to vector<8x128xf32>
    %159 = math.tanh %158 : vector<8x128xf32>
    %160 = vector.extract_strided_slice %157 {offsets = [0, 0], sizes = [8, 128], strides = [1, 1]} : vector<8x384xf32> to vector<8x128xf32>
    %161 = vector.extract_strided_slice %157 {offsets = [0, 128], sizes = [8, 128], strides = [1, 1]} : vector<8x384xf32> to vector<8x128xf32>
    %162 = vector.extract_strided_slice %157 {offsets = [0, 256], sizes = [8, 128], strides = [1, 1]} : vector<8x384xf32> to vector<8x128xf32>
    %163 = arith.mulf %161, %113 : vector<8x128xf32>
    %164 = arith.mulf %160, %159 : vector<8x128xf32>
    %165 = arith.addf %163, %164 : vector<8x128xf32>
    %166 = math.tanh %165 : vector<8x128xf32>
    %167 = arith.mulf %162, %166 : vector<8x128xf32>
    %168 = arith.truncf %167 : vector<8x128xf32> to vector<8x128xbf16>
    %c2_63 = arith.constant 2 : index
    %c8_64 = arith.constant 8 : index
    %c0_65 = arith.constant 0 : index
    %169 = vector.load %arg8[%c2_63, %c8_64, %c0_65] : memref<4x16x128xbf16, #tpu.memory_space<vmem>>, vector<1x8x128xbf16>
    %170 = vector.shape_cast %169 : vector<1x8x128xbf16> to vector<8x128xbf16>
    %171 = vector.shape_cast %168 : vector<8x128xbf16> to vector<1x8x128xbf16>
    tpu.vector_store %arg8[%c2_63, %c8_64, %c0_65], %171 {strides = array<i32>} : memref<4x16x128xbf16, #tpu.memory_space<vmem>>, vector<1x8x128xbf16>,
    %c48 = arith.constant 48 : index
    %c0_66 = arith.constant 0 : index
    %172 = vector.load %arg11[%c48, %c0_66] : memref<64x512xf32, #tpu.memory_space<vmem>>, vector<8x512xf32>
    %173 = arith.truncf %141 : vector<8x128xf32> to vector<8x128xbf16>
    %cst_67 = arith.constant dense<0.000000e+00> : vector<8x512xf32>
    %174 = tpu.matmul %173, %11, %cst_67 {dimension_numbers = #tpu.dot_dimension_numbers<[1], [0], [0], [1], [0, 0, 1, 1], [], []>} : vector<8x128xbf16>, vector<128x512xbf16>, vector<8x512xf32> -> vector<8x512xf32>
    %175 = arith.addf %172, %174 : vector<8x512xf32>
    %176 = vector.extract_strided_slice %175 {offsets = [0, 0], sizes = [8, 384], strides = [1, 1]} : vector<8x512xf32> to vector<8x384xf32>
    %cst_68 = arith.constant 5.000000e-01 : f32
    %177 = vector.broadcast %cst_68 : f32 to vector<8x384xf32>
    %178 = arith.mulf %177, %176 : vector<8x384xf32>
    %179 = math.tanh %178 : vector<8x384xf32>
    %cst_69 = arith.constant 5.000000e-01 : f32
    %180 = vector.broadcast %cst_69 : f32 to vector<8x384xf32>
    %181 = arith.mulf %180, %179 : vector<8x384xf32>
    %cst_70 = arith.constant 5.000000e-01 : f32
    %182 = vector.broadcast %cst_70 : f32 to vector<8x384xf32>
    %183 = arith.addf %181, %182 : vector<8x384xf32>
    %184 = vector.extract_strided_slice %175 {offsets = [0, 384], sizes = [8, 128], strides = [1, 1]} : vector<8x512xf32> to vector<8x128xf32>
    %185 = math.tanh %184 : vector<8x128xf32>
    %186 = vector.extract_strided_slice %183 {offsets = [0, 0], sizes = [8, 128], strides = [1, 1]} : vector<8x384xf32> to vector<8x128xf32>
    %187 = vector.extract_strided_slice %183 {offsets = [0, 128], sizes = [8, 128], strides = [1, 1]} : vector<8x384xf32> to vector<8x128xf32>
    %188 = vector.extract_strided_slice %183 {offsets = [0, 256], sizes = [8, 128], strides = [1, 1]} : vector<8x384xf32> to vector<8x128xf32>
    %189 = arith.mulf %187, %139 : vector<8x128xf32>
    %190 = arith.mulf %186, %185 : vector<8x128xf32>
    %191 = arith.addf %189, %190 : vector<8x128xf32>
    %192 = math.tanh %191 : vector<8x128xf32>
    %193 = arith.mulf %188, %192 : vector<8x128xf32>
    %194 = arith.truncf %193 : vector<8x128xf32> to vector<8x128xbf16>
    %c3 = arith.constant 3 : index
    %c0_71 = arith.constant 0 : index
    %c0_72 = arith.constant 0 : index
    %195 = vector.load %arg8[%c3, %c0_71, %c0_72] : memref<4x16x128xbf16, #tpu.memory_space<vmem>>, vector<1x8x128xbf16>
    %196 = vector.shape_cast %195 : vector<1x8x128xbf16> to vector<8x128xbf16>
    %197 = vector.shape_cast %194 : vector<8x128xbf16> to vector<1x8x128xbf16>
    tpu.vector_store %arg8[%c3, %c0_71, %c0_72], %197 {strides = array<i32>} : memref<4x16x128xbf16, #tpu.memory_space<vmem>>, vector<1x8x128xbf16>,
    %c56 = arith.constant 56 : index
    %c0_73 = arith.constant 0 : index
    %198 = vector.load %arg11[%c56, %c0_73] : memref<64x512xf32, #tpu.memory_space<vmem>>, vector<8x512xf32>
    %199 = arith.truncf %167 : vector<8x128xf32> to vector<8x128xbf16>
    %cst_74 = arith.constant dense<0.000000e+00> : vector<8x512xf32>
    %200 = tpu.matmul %199, %11, %cst_74 {dimension_numbers = #tpu.dot_dimension_numbers<[1], [0], [0], [1], [0, 0, 1, 1], [], []>} : vector<8x128xbf16>, vector<128x512xbf16>, vector<8x512xf32> -> vector<8x512xf32>
    %201 = arith.addf %198, %200 : vector<8x512xf32>
    %202 = vector.extract_strided_slice %201 {offsets = [0, 0], sizes = [8, 384], strides = [1, 1]} : vector<8x512xf32> to vector<8x384xf32>
    %cst_75 = arith.constant 5.000000e-01 : f32
    %203 = vector.broadcast %cst_75 : f32 to vector<8x384xf32>
    %204 = arith.mulf %203, %202 : vector<8x384xf32>
    %205 = math.tanh %204 : vector<8x384xf32>
    %cst_76 = arith.constant 5.000000e-01 : f32
    %206 = vector.broadcast %cst_76 : f32 to vector<8x384xf32>
    %207 = arith.mulf %206, %205 : vector<8x384xf32>
    %cst_77 = arith.constant 5.000000e-01 : f32
    %208 = vector.broadcast %cst_77 : f32 to vector<8x384xf32>
    %209 = arith.addf %207, %208 : vector<8x384xf32>
    %210 = vector.extract_strided_slice %201 {offsets = [0, 384], sizes = [8, 128], strides = [1, 1]} : vector<8x512xf32> to vector<8x128xf32>
    %211 = math.tanh %210 : vector<8x128xf32>
    %212 = vector.extract_strided_slice %209 {offsets = [0, 0], sizes = [8, 128], strides = [1, 1]} : vector<8x384xf32> to vector<8x128xf32>
    %213 = vector.extract_strided_slice %209 {offsets = [0, 128], sizes = [8, 128], strides = [1, 1]} : vector<8x384xf32> to vector<8x128xf32>
    %214 = vector.extract_strided_slice %209 {offsets = [0, 256], sizes = [8, 128], strides = [1, 1]} : vector<8x384xf32> to vector<8x128xf32>
    %215 = arith.mulf %213, %165 : vector<8x128xf32>
    %216 = arith.mulf %212, %211 : vector<8x128xf32>
    %217 = arith.addf %215, %216 : vector<8x128xf32>
    %218 = math.tanh %217 : vector<8x128xf32>
    %219 = arith.mulf %214, %218 : vector<8x128xf32>
    %220 = arith.truncf %219 : vector<8x128xf32> to vector<8x128xbf16>
    %c3_78 = arith.constant 3 : index
    %c8_79 = arith.constant 8 : index
    %c0_80 = arith.constant 0 : index
    %221 = vector.load %arg8[%c3_78, %c8_79, %c0_80] : memref<4x16x128xbf16, #tpu.memory_space<vmem>>, vector<1x8x128xbf16>
    %222 = vector.shape_cast %221 : vector<1x8x128xbf16> to vector<8x128xbf16>
    %223 = vector.shape_cast %220 : vector<8x128xbf16> to vector<1x8x128xbf16>
    tpu.vector_store %arg8[%c3_78, %c8_79, %c0_80], %223 {strides = array<i32>} : memref<4x16x128xbf16, #tpu.memory_space<vmem>>, vector<1x8x128xbf16>,
    %c0_81 = arith.constant 0 : index
    %c0_82 = arith.constant 0 : index
    %224 = vector.load %arg9[%c0_81, %c0_82] : memref<16x128xf32, #tpu.memory_space<vmem>>, vector<8x128xf32>
    tpu.vector_store %arg9[%c0_81, %c0_82], %193 {strides = array<i32>} : memref<16x128xf32, #tpu.memory_space<vmem>>, vector<8x128xf32>,
    %c0_83 = arith.constant 0 : index
    %c0_84 = arith.constant 0 : index
    %225 = vector.load %arg10[%c0_83, %c0_84] : memref<16x128xf32, #tpu.memory_space<vmem>>, vector<8x128xf32>
    tpu.vector_store %arg10[%c0_83, %c0_84], %191 {strides = array<i32>} : memref<16x128xf32, #tpu.memory_space<vmem>>, vector<8x128xf32>,
    %c8_85 = arith.constant 8 : index
    %c0_86 = arith.constant 0 : index
    %226 = vector.load %arg9[%c8_85, %c0_86] : memref<16x128xf32, #tpu.memory_space<vmem>>, vector<8x128xf32>
    tpu.vector_store %arg9[%c8_85, %c0_86], %219 {strides = array<i32>} : memref<16x128xf32, #tpu.memory_space<vmem>>, vector<8x128xf32>,
    %c8_87 = arith.constant 8 : index
    %c0_88 = arith.constant 0 : index
    %227 = vector.load %arg10[%c8_87, %c0_88] : memref<16x128xf32, #tpu.memory_space<vmem>>, vector<8x128xf32>
    tpu.vector_store %arg10[%c8_87, %c0_88], %217 {strides = array<i32>} : memref<16x128xf32, #tpu.memory_space<vmem>>, vector<8x128xf32>,
    return
  }
  func.func @transform_0(%arg0: i32, %arg1: i32) -> (i32, i32, i32) {
    %c0_i32 = arith.constant 0 : i32
    %c0_i32_0 = arith.constant 0 : i32
    return %arg1, %arg0, %c0_i32 : i32, i32, i32
  }
  func.func @transform_1(%arg0: i32, %arg1: i32) -> (i32, i32) {
    %c0_i32 = arith.constant 0 : i32
    %c0_i32_0 = arith.constant 0 : i32
    return %arg0, %c0_i32 : i32, i32
  }
  func.func @transform_2(%arg0: i32, %arg1: i32) -> (i32, i32) {
    %c0_i32 = arith.constant 0 : i32
    %c0_i32_0 = arith.constant 0 : i32
    return %arg0, %c0_i32 : i32, i32
  }
  func.func @transform_3(%arg0: i32, %arg1: i32) -> (i32, i32) {
    %c0_i32 = arith.constant 0 : i32
    %c0_i32_0 = arith.constant 0 : i32
    %c0_i32_1 = arith.constant 0 : i32
    return %c0_i32, %c0_i32_0 : i32, i32
  }
  func.func @transform_4(%arg0: i32, %arg1: i32) -> (i32, i32) {
    %c0_i32 = arith.constant 0 : i32
    %c0_i32_0 = arith.constant 0 : i32
    %c0_i32_1 = arith.constant 0 : i32
    return %c0_i32, %c0_i32_0 : i32, i32
  }
  func.func @transform_5(%arg0: i32, %arg1: i32) -> (i32, i32) {
    %c0_i32 = arith.constant 0 : i32
    %c0_i32_0 = arith.constant 0 : i32
    %c0_i32_1 = arith.constant 0 : i32
    return %c0_i32, %c0_i32_0 : i32, i32
  }
  func.func @transform_6(%arg0: i32, %arg1: i32) -> (i32, i32, i32) {
    %c0_i32 = arith.constant 0 : i32
    %c0_i32_0 = arith.constant 0 : i32
    return %arg1, %arg0, %c0_i32 : i32, i32, i32
  }
  func.func @transform_7(%arg0: i32, %arg1: i32) -> (i32, i32) {
    %c0_i32 = arith.constant 0 : i32
    %c0_i32_0 = arith.constant 0 : i32
    return %arg0, %c0_i32 : i32, i32
  }
  func.func @transform_8(%arg0: i32, %arg1: i32) -> (i32, i32) {
    %c0_i32 = arith.constant 0 : i32
    %c0_i32_0 = arith.constant 0 : i32
    return %arg0, %c0_i32 : i32, i32
  }
}

</mosaic_0001>

<bundles_post_ra>
// kernel: tpu_custom_call.1
= control target key start
LH: loop header
LB: loop body
LE: loop exit
PB: predicated region body
PF: predicated region fallthrough
CT: control target
= control target key end

     0   :  { %s3720_s0 = inlined_call_operand.hbm [shape: bf16[8,16,16], index: 0, kind: input, shape index: {}]   ;;  %s3721_s1 = inlined_call_operand.hbm [shape: f32[16,128], index: 1, kind: input, shape index: {}]   ;;  %s3722_s2 = inlined_call_operand.hbm [shape: f32[16,128], index: 2, kind: input, shape index: {}]   ;;  %s3723_s3 = inlined_call_operand.hbm [shape: bf16[16,512], index: 3, kind: input, shape index: {}]   ;;  %s3724_s4 = inlined_call_operand.hbm [shape: bf16[128,512], index: 4, kind: input, shape index: {}]   ;;  %s3725_s5 = inlined_call_operand.hbm [shape: f32[1,512], index: 5, kind: input, shape index: {}]   ;;  %s3726_s6 = inlined_call_operand.hbm [shape: bf16[8,16,128], index: 6, kind: output, shape index: {0}]   ;;  %s3727_s7 = inlined_call_operand.hbm [shape: f32[16,128], index: 7, kind: output, shape index: {1}]   ;;  %s3728_s8 = inlined_call_operand.hbm [shape: f32[16,128], index: 8, kind: output, shape index: {2}]  }
   0x1   :  { %3742 = sst [smem:[#allocation46_spill]] %s3720_s0 }
   0x2   :  { %3743 = sst [smem:[#allocation47_spill]] %s3721_s1 }
   0x3   :  { %3744 = sst [smem:[#allocation48_spill]] %s3722_s2 }
   0x4   :  { %3745 = sst [smem:[#allocation49_spill]] %s3728_s8 }
   0x5   :  { %14 = vsyncpa [#allocation4], 0 }
   0x6   :  { %16 = vsyncpa [#allocation4 + $0x1], 0 }
   0x7   :  { %17 = vsyncpa [#allocation7], 0 }
   0x8   :  { %18 = vsyncpa [#allocation10], 0 }
   0x9   :  { %19 = vsyncpa [#allocation13], 0 }
   0xa   :  { %20 = vsyncpa [#allocation5], 0 }
   0xb   :  { %22 = vsyncpa [#allocation5 + $0x1], 0 }
   0xc   :  { %23 = vsyncpa [#allocation16], 0  ;;  %s2805_s27 = smov 0   ;;  %s2807_s28 = smov 0  }
   0xd   :  { %s2809_s29 = smov 0   ;;  %s2811_s30 = smov 0  }
   0xe   :  { %s2813_s9 = smov 0   ;;  %s2815_s10 = smov 0  }
   0xf LB: > { %s3729_s11 = sadd.s32 4294967295, %s2738_s10   ;;  %p2022_p0 = scmp.ge.s32.totalorder %s2738_s10, 1  ;;  %s2738_s10 = sphi %s2815_s10, %s29_s10   ;;  %s2734_s9 = sphi %s2813_s9, %s3820_s9   ;;  %s2730_s30 = sphi %s2811_s30, %s3819_s30   ;;  %s2726_s29 = sphi %s2809_s29, %s3818_s29   ;;  %s2722_s28 = sphi %s2807_s28, %s3817_s28   ;;  %s2718_s27 = sphi %s2805_s27, %s3816_s27  }
  0x10   : > { %p2839_p1 = scmp.eq.s32.totalorder %s3729_s11, 0  ;;  %p269_p2 = scmp.lt.s32.totalorder %s2738_s10, 3 }
  0x11   : > { %s2740_s14 = smov [#allocation6]   ;;  %s2741_s17 = smov [#allocation9]  }
  0x12   : > { %s3746_s12 = scalar_select %p2839_p1, 1, 0 }
  0x13   : > { %p2844_p3 = pnand %p2022_p0, %p269_p2  ;;  %s284_s15 = sshll.u32 %s2740_s14, 4  ;;  %s2848_s15 = int_to_ptr.vmem [resolvable:$true] %s284_s15 }
  0x14   : > { %s313_s18 = sshll.u32 %s2741_s17, 4  ;;  %s3749_s1 = sld [smem:[#allocation47_spill]]  ;;  %s2859_s18 = int_to_ptr.vmem [resolvable:$true] %s313_s18 }
  0x15   : > { %s3747_s13 = scalar_select %p2844_p3, 1, 0 }
  0x16   : > { %p2142_p4 = pneg %p2844_p3 }
  0x18   : > { %p2855_p6 = pnand %p2142_p4, %p2839_p1 }
  0x1a   : > { %s2418_s21 = scalar_lea.hbm %s3749_s1, 256  ;;  %p2869_p8 = pneg %p2855_p6 }
  0x1b   : > { %p2419_p7 = scmp.ne.s32.totalorder %s3749_s1, %s2418_s21  ;;  %p2425_p11 = scmp.lt.u32.totalorder %s2418_s21, %s3749_s1 }
  0x1d   : > { %p2421_p9 = pnand %p2869_p8, %p2419_p7 }
  0x1f   : > { %p2422_p10 = pneg %p2421_p9 }
  0x21   : > { %p2427_p12 = pnand %p2425_p11, %p2422_p10 }
  0x23   : > { %2430 = shalt.err (!%p2427_p12)
}
  0x24   : > { %s2431_s14 = scalar_lea.vmem %s2848_s15, 256  ;;  %p2439_p4 = scmp.lt.s32.totalorder %s2848_s15, %s2848_s15 }
  0x25   : > { %p2432_p13 = scmp.ne.s32.totalorder %s2848_s15, %s2431_s14  ;;  %p2440_p5 = scmp.lt.s32.totalorder %s2431_s14, %s2431_s14 }
  0x27   : > { %p2434_p0 = pnand %p2432_p13, %p2869_p8  ;;  %p2441_p7 = por %p2440_p5, %p2439_p4 }
  0x29   : > { %p2435_p2 = pneg %p2434_p0 }
  0x2b   : > { %p2442_p9 = pnand %p2441_p7, %p2435_p2 }
  0x2d   : > { %2445 = shalt.err (!%p2442_p9)
}
  0x2e   : > { %s3731_s17 = smov 128   ;;  %s3732_s19 = smov 8  }
  0x2f   : > { %2145 = dma.hbm_to_vmem [thread:$0]  (!%p2855_p6), %s3749_s1, 256, %s2848_s15, [#allocation7], %s3731_s17, %s3731_s17, %s3732_s19  }
  0x30   : > { %s2446_s25 = scalar_lea.hbm %s3723_s3, 512 }
  0x31   : > { %p2447_p5 = scmp.ne.s32.totalorder %s3723_s3, %s2446_s25  ;;  %p2453_p12 = scmp.lt.u32.totalorder %s2446_s25, %s3723_s3 }
  0x33   : > { %p2449_p10 = pnand %p2447_p5, %p2869_p8 }
  0x35   : > { %p2450_p11 = pneg %p2449_p10 }
  0x37   : > { %p2455_p13 = pnand %p2453_p12, %p2450_p11 }
  0x39   : > { %2458 = shalt.err (!%p2455_p13)
}
  0x3a   : > { %s2459_s15 = scalar_lea.vmem %s2859_s18, 512  ;;  %p2467_p7 = scmp.lt.s32.totalorder %s2859_s18, %s2859_s18 }
  0x3b   : > { %p2460_p0 = scmp.ne.s32.totalorder %s2859_s18, %s2459_s15  ;;  %p2468_p9 = scmp.lt.s32.totalorder %s2459_s15, %s2459_s15 }
  0x3d   : > { %p2462_p2 = pnand %p2460_p0, %p2869_p8  ;;  %p2469_p5 = por %p2468_p9, %p2467_p7 }
  0x3f   : > { %p2463_p4 = pneg %p2462_p2 }
  0x41   : > { %p2470_p10 = pnand %p2469_p5, %p2463_p4 }
  0x43   : > { %2473 = shalt.err (!%p2470_p10)
}
  0x44   : > { %s3736_s20 = smov 256   ;;  %s2745_s8 = smov 16  }
  0x45   : > { %2151 = dma.hbm_to_vmem [thread:$0]  (!%p2855_p6), %s3723_s3, 512, %s2859_s18, [#allocation10], %s3736_s20, %s3736_s20, %s2745_s8  }
  0x46   : > { %s2746_s22 = smov [#allocation8]   ;;  %s2747_s25 = smov [#allocation11]  }
  0x47   : > { %s300_s23 = sshll.u32 %s2746_s22, 4  ;;  %s326_s26 = sshll.u32 %s2747_s25, 4  ;;  %s301_s23 = int_to_ptr.vmem [resolvable:$true] %s300_s23  ;;  %s2919_s26 = int_to_ptr.vmem [resolvable:$true] %s326_s26 }
  0x48   : > { %s3751_s2 = sld [smem:[#allocation48_spill]] }
  0x4e   : > { %s2474_s17 = scalar_lea.hbm %s3751_s2, 256 }
  0x4f   : > { %p2475_p11 = scmp.ne.s32.totalorder %s3751_s2, %s2474_s17  ;;  %p2481_p0 = scmp.lt.u32.totalorder %s2474_s17, %s3751_s2 }
  0x51   : > { %p2477_p12 = pnand %p2475_p11, %p2869_p8 }
  0x53   : > { %p2478_p13 = pneg %p2477_p12 }
  0x55   : > { %p2483_p2 = pnand %p2481_p0, %p2478_p13 }
  0x57   : > { %2486 = shalt.err (!%p2483_p2)
}
  0x58   : > { %s2487_s21 = scalar_lea.vmem %s301_s23, 256  ;;  %p2495_p5 = scmp.lt.s32.totalorder %s301_s23, %s301_s23 }
  0x59   : > { %p2488_p4 = scmp.ne.s32.totalorder %s301_s23, %s2487_s21  ;;  %p2496_p10 = scmp.lt.s32.totalorder %s2487_s21, %s2487_s21 }
  0x5b   : > { %p2490_p7 = pnand %p2488_p4, %p2869_p8  ;;  %p2497_p3 = por %p2496_p10, %p2495_p5 }
  0x5d   : > { %p2491_p9 = pneg %p2490_p7 }
  0x5f   : > { %p2498_p1 = pnand %p2497_p3, %p2491_p9 }
  0x61   : > { %2501 = shalt.err (!%p2498_p1)
}
  0x62   : > { %s3752_s1 = smov 8   ;;  %s3753_s19 = smov 128  }
  0x63   : > { %2148 = dma.hbm_to_vmem [thread:$0]  (!%p2855_p6), %s3751_s2, 256, %s301_s23, [#allocation7], %s3753_s19, %s3753_s19, %s3752_s1  }
  0x64   : > { %s2502_s15 = scalar_lea.hbm %s3724_s4, 4096 }
  0x65   : > { %p2503_p11 = scmp.ne.s32.totalorder %s3724_s4, %s2502_s15  ;;  %p2509_p12 = scmp.lt.u32.totalorder %s2502_s15, %s3724_s4 }
  0x67   : > { %p2505_p1 = pnand %p2503_p11, %p2869_p8 }
  0x69   : > { %p2506_p3 = pneg %p2505_p1 }
  0x6b   : > { %p2511_p13 = pnand %p2509_p12, %p2506_p3 }
  0x6d   : > { %2514 = shalt.err (!%p2511_p13)
}
  0x6e   : > { %s2515_s23 = scalar_lea.vmem %s2919_s26, 4096  ;;  %p2523_p7 = scmp.lt.s32.totalorder %s2919_s26, %s2919_s26 }
  0x6f   : > { %p2516_p0 = scmp.ne.s32.totalorder %s2919_s26, %s2515_s23  ;;  %p2524_p9 = scmp.lt.s32.totalorder %s2515_s23, %s2515_s23 }
  0x71   : > { %p2518_p2 = pnand %p2516_p0, %p2869_p8  ;;  %p2525_p5 = por %p2524_p9, %p2523_p7 }
  0x73   : > { %p2519_p4 = pneg %p2518_p2 }
  0x75   : > { %p2526_p10 = pnand %p2525_p5, %p2519_p4 }
  0x77   : > { %2529 = shalt.err (!%p2526_p10)
}
  0x78   : > { %s3754_s20 = smov 256   ;;  %s2748_s22 = smov [#allocation12]  }
  0x79   : > { %2154 = dma.hbm_to_vmem [thread:$0]  (!%p2855_p6), %s3724_s4, 4096, %s2919_s26, [#allocation10], %s3754_s20, %s3754_s20, %s2745_s8  }
  0x7a   : > { %s340_s17 = sshll.u32 %s2748_s22, 4  ;;  %s2530_s15 = scalar_lea.hbm %s3725_s5, 64  ;;  %s341_s17 = int_to_ptr.vmem [resolvable:$true] %s340_s17 }
  0x7b   : > { %p2531_p11 = scmp.ne.s32.totalorder %s3725_s5, %s2530_s15  ;;  %p2537_p12 = scmp.lt.u32.totalorder %s2530_s15, %s3725_s5 }
  0x7d   : > { %p2533_p1 = pnand %p2531_p11, %p2869_p8 }
  0x7f   : > { %p2534_p3 = pneg %p2533_p1 }
  0x81   : > { %p2539_p13 = pnand %p2537_p12, %p2534_p3 }
  0x83   : > { %2542 = shalt.err (!%p2539_p13)
}
  0x84   : > { %s2543_s8 = scalar_lea.vmem %s341_s17, 64  ;;  %p2551_p7 = scmp.lt.s32.totalorder %s341_s17, %s341_s17 }
  0x85   : > { %p2544_p0 = scmp.ne.s32.totalorder %s341_s17, %s2543_s8  ;;  %p2552_p9 = scmp.lt.s32.totalorder %s2543_s8, %s2543_s8 }
  0x87   : > { %p2546_p2 = pnand %p2544_p0, %p2869_p8  ;;  %p2553_p5 = por %p2552_p9, %p2551_p7 }
  0x89   : > { %p2547_p4 = pneg %p2546_p2 }
  0x8b   : > { %p2554_p10 = pnand %p2553_p5, %p2547_p4 }
  0x8d   : > { %2557 = shalt.err (!%p2554_p10)
}
  0x8e   : > { %2157 = dma.hbm_to_vmem [thread:$0]  (!%p2855_p6), %s3725_s5, 64, %s341_s17, [#allocation13]  }
  0x8f   : > { %s2021_s24 = sadd.s32 4294967294, %s2738_s10   ;;  %s38_s1 = sadd.s32 1, %s2734_s9 }
  0x90   : > { %s50_s16 = sadd.s32 1, %s2726_s29  ;;  %p39_p8 = scmp.ge.s32.totalorder %s38_s1, 2 }
  0x91   : > { %p57_p11 = scmp.ne.s32.totalorder %s2726_s29, %s2722_s28  ;;  %p58_p1 = scmp.eq.s32.totalorder %s2738_s10, 0 }
  0x92   : > { %p63_p3 = scmp.ne.s32.totalorder %s2722_s28, %s2718_s27  ;;  %s3822_s1 = smov (%p39_p8, %s38_s1), 0 }
  0x93   : > { %p2996_p12 = por %p58_p1, %p57_p11  ;;  %p3756_p13 = scmp.ne.s32.totalorder %s3746_s12, 0 }
  0x94   : > { %s45_s17 = ssub.s32 %s2734_s9, %s3822_s1  ;;  %s3758_s25 = sadd.s32 4294967295, %s2738_s10  }
  0x95   : > { %p3002_p6 = por %p3756_p13, %p63_p3  ;;  %p3010_p0 = scmp.eq.s32.totalorder %s3758_s25, 1 }
  0x96   : > { %p48_p2 = scmp.eq.s32.totalorder %s45_s17, 0  ;;  %p210_p4 = scmp.eq.s32.totalorder %s2021_s24, 1 }
  0x97   : > { %s3759_s14 = scalar_select %p3010_p0, 1, 0 }
  0x98   : > { %p3016_p7 = por %p3010_p0, %p57_p11  ;;  %p2171_p9 = scmp.lt.s32.totalorder %s2738_s10, 2 }
  0x99   : > { %s3022_s11 = scalar_select %p48_p2, %s2726_s29, %s50_s16  }
  0x9a   : > { %s3760_s15 = scalar_select %p3016_p7, 1, 0 }
  0x9b   : > { %p3024_p5 = por %p210_p4, %p63_p3  ;;  %s351_s21 = sand.u32 1, %s2726_s29  }
  0x9c   : > { %s2029_s23 = sshll.u32 %s351_s21, 5  ;;  %s2107_s8 = sshll.u32 %s2734_s9, 9 }
  0x9d   : > { %s3761_s18 = scalar_select %p3024_p5, 1, 0 }
  0x9e   : > { %s3762_s0 = sld [smem:[#allocation46_spill]]  ;;  %s355_s24 = scalar_lea.vmem [#allocation3], %s2029_s23 }
  0x9f   : > { %s365_s25 = sshll.u32 %s355_s24, 4  ;;  %p3039_p10 = pnand %p2171_p9, %p2996_p12  ;;  %s3035_s25 = int_to_ptr.vmem [resolvable:$true] %s365_s25 }
  0xa0   : > { %s3043_s2 = scalar_lea.sflag [#allocation4], %s351_s21 }
  0xa1   : > { %p2560_p11 = pneg %p3039_p10 }
  0xa4   : > { %s3033_s17 = scalar_lea.hbm %s3762_s0, %s2107_s8  ;;  %s2563_s19 = scalar_lea.hbm %s3762_s0, 1024 }
  0xa5   : > { %s2558_s26 = scalar_lea.hbm %s3033_s17, 512  ;;  %p2564_p12 = scmp.lt.u32.totalorder %s3033_s17, %s3762_s0 }
  0xa6   : > { %p2559_p8 = scmp.ne.s32.totalorder %s3033_s17, %s2558_s26  ;;  %p2565_p13 = scmp.lt.u32.totalorder %s2563_s19, %s2558_s26 }
  0xa7   : > { %p2567_p4 = scmp.lt.u32.totalorder %s2558_s26, %s3033_s17 }
  0xa8   : > { %p2561_p1 = pnand %p2560_p11, %p2559_p8  ;;  %p2566_p2 = por %p2565_p13, %p2564_p12 }
  0xaa   : > { %p2562_p3 = pneg %p2561_p1  ;;  %p2568_p9 = por %p2567_p4, %p2566_p2 }
  0xac   : > { %p2569_p5 = pnand %p2568_p9, %p2562_p3 }
  0xae   : > { %2572 = shalt.err (!%p2569_p5)
}
  0xaf   : > { %s2573_s21 = scalar_lea.vmem %s3035_s25, 512  ;;  %s2749_s23 = smov [#allocation3]  }
  0xb0   : > { %p2574_p8 = scmp.ne.s32.totalorder %s3035_s25, %s2573_s21  ;;  %s2578_s8 = sshll.u32 %s2749_s23, 4  ;;  %s2579_s8 = int_to_ptr.vmem [resolvable:$false] %s2578_s8 }
  0xb1   : > { %s2580_s20 = scalar_lea.vmem %s2579_s8, 1024  ;;  %p2581_p0 = scmp.lt.s32.totalorder %s3035_s25, %s2579_s8 }
  0xb2   : > { %p2576_p1 = pnand %p2574_p8, %p2560_p11  ;;  %p2582_p12 = scmp.lt.s32.totalorder %s2580_s20, %s2573_s21 }
  0xb4   : > { %p2577_p7 = pneg %p2576_p1  ;;  %p2583_p13 = por %p2582_p12, %p2581_p0 }
  0xb6   : > { %p2584_p2 = pnand %p2583_p13, %p2577_p7 }
  0xb8   : > { %2587 = shalt.err (!%p2584_p2)
}
  0xb9   : > { %s2750_s26 = smov 64   ;;  %s2751_s19 = smov 4  }
  0xba   : > { %2161 = dma.hbm_to_vmem [thread:$0]  (!%p3039_p10), %s3033_s17, 512, %s3035_s25, %s3043_s2, %s2750_s26, %s2750_s26, %s2751_s19  }
  0xbb   : > { %p3764_p5 = scmp.ne.s32.totalorder %s3747_s13, 0 }
  0xbd   : > { %377 = sbr.rel (%p3764_p5) target bundleno = 1359 (0x54f), region = 44 }
  0xc4   : > { %s3074_s24 = sand.u32 1, %s2722_s28  }
  0xc5   : > { %s2034_s21 = sshll.u32 %s3074_s24, 5  ;;  %s380_s23 = scalar_lea.sflag [#allocation4], %s3074_s24 }
  0xc6   : > { %s3078_s8 = scalar_lea.vmem [#allocation3], %s2034_s21 }
  0xc7   : > { %2693 = dma.done.wait (%p3002_p6), %s380_s23, 512  }
  0xc8   : > { %2695 = vsyncadd (%p3002_p6), %s380_s23, 4294966784  ;;  %p3765_p0 = scmp.ne.s32.totalorder %s3746_s12, 0 }
  0xca   : > { %2697 = dma.done.wait (%p3765_p0), [#allocation7], 512  }
  0xcb   : > { %2699 = vsyncadd (%p3765_p0), [#allocation7], 4294966784 }
  0xcc   : > { %2701 = dma.done.wait (%p3765_p0), [#allocation10], 4608  }
  0xcd   : > { %2703 = vsyncadd (%p3765_p0), [#allocation10], 4294962688 }
  0xce   : > { %2705 = dma.done.wait (%p3765_p0), [#allocation13], 64  }
  0xcf   : > { %2707 = vsyncadd (%p3765_p0), [#allocation13], 4294967232  ;;  %s3096_s2 = scalar_lea.vmem [#allocation14], %s2034_s21  ;;  %p2041_p6 = scmp.ne.s32.totalorder %s2730_s30, 0 }
  0xd0   : > { %v449_v0 = vld [vmem:[#allocation6] sm:$0xff] (!%p2041_p6)  ;;  %v450_v1 = vld [vmem:[#allocation6 + $0x8] sm:$0xff] (!%p2041_p6)  ;;  %v453_v2 = vld [vmem:[#allocation8] sm:$0xff] (!%p2041_p6) }
  0xd1   : > { %448 = sbr.rel (%p2041_p6) target bundleno = 216 (0xd8), region = 72  ;;  %451 = vst [vmem:[#allocation15] sm:$0xff] (!%p2041_p6), %v449_v0  ;;  %452 = vst [vmem:[#allocation15 + $0x8] sm:$0xff] (!%p2041_p6), %v450_v1  ;;  %v454_v3 = vld [vmem:[#allocation8 + $0x8] sm:$0xff] (!%p2041_p6) }
  0xd2   : > { %455 = vst [vmem:[#allocation17] sm:$0xff] (!%p2041_p6), %v453_v2  ;;  %456 = vst [vmem:[#allocation17 + $0x8] sm:$0xff] (!%p2041_p6), %v454_v3 }
  0xd8 PF: > { %v2248_v4 = vld [vmem:[#allocation9 + $0x4] ss:$16 sps:$4 sm:$0xff]   ;;  %v2250_v5 = vld [vmem:[#allocation9 + $0xc] ss:$16 sps:$4 sm:$0xff]   ;;  %v3740_v6 = vmov 0   ;;  %vm531_vm0 = vcmask 130048   ;;  %v471_v49 = vlaneseq }
  0xd9   : > { %576 = vmatprep.mubr.bf16.mxu0 %v3740_v6  ;;  %649 = vmatprep.mubr.bf16.mxu1 %v3740_v6  ;;  %v2252_v7 = vld [vmem:[#allocation9] ss:$16 sps:$4 sm:$0xff]   ;;  %v2253_v8 = vld [vmem:[#allocation9 + $0x8] ss:$16 sps:$4 sm:$0xff]   ;;  %v3102_v10 = vld [vmem:[#allocation11 + $0x4] ss:$16 sps:$4 sm:$0xff]  }
  0xda   : > { %544 = vmatprep.subr.bf16.mxu0 %v2248_v4  ;;  %617 = vmatprep.subr.bf16.mxu1 %v2250_v5  ;;  %v2254_v9 = vld [vmem:[%s3078_s8] sm:$0xff]   ;;  %v3104_v11 = vld [vmem:[#allocation11 + $0xc] ss:$16 sps:$4 sm:$0xff]   ;;  %v3109_v13 = vld [vmem:[#allocation11 + $0x8] ss:$16 sps:$4 sm:$0xff]   ;;  %v472_v50 = vshrl.u32 %v471_v49, 7 }
  0xdb   : > { %545 = vmatpush1.bf16.msra.mxu0 %v2252_v7  ;;  %618 = vmatpush1.bf16.msra.mxu1 %v2253_v8  ;;  %v3106_v12 = vld [vmem:[#allocation11] ss:$16 sps:$4 sm:$0xff]   ;;  %v3113_v14 = vld [vmem:[#allocation11 + $0x24] ss:$16 sps:$4 sm:$0xff]   ;;  %v3117_v15 = vld [vmem:[#allocation11 + $0x2c] ss:$16 sps:$4 sm:$0xff]  }
  0xdc   : > { %923 = vmatprep.subr.bf16.mxu0 %v3102_v10  ;;  %964 = vmatprep.subr.bf16.mxu1 %v3104_v11  ;;  %v3119_v16 = vld [vmem:[#allocation11 + $0x20] ss:$16 sps:$4 sm:$0xff]   ;;  %v3121_v17 = vld [vmem:[#allocation11 + $0x28] ss:$16 sps:$4 sm:$0xff]   ;;  %v3128_v19 = vld [vmem:[#allocation11 + $0x44] ss:$16 sps:$4 sm:$0xff]  }
  0xdd   : > { %v2267_v18 = vld [vmem:[%s3078_s8 + $0x8] sm:$0xff]   ;;  %v3134_v21 = vld [vmem:[#allocation11 + $0x40] ss:$16 sps:$4 sm:$0xff]   ;;  %v3140_v23 = vld [vmem:[#allocation11 + $0x64] ss:$16 sps:$4 sm:$0xff]   ;;  %v473_v57 = vsub.s32 0, %v472_v50 }
  0xde   : > { %2050 = vmatmul.mubr.msk.bf16.vlgmr.msra.gmra.mrb[0].mxu0 %vm531_vm0, %v2254_v9  ;;  %2054 = vmatmul.mubr.msk.bf16.vlgmr.msra.gmra.mrb[0].mxu1 %vm531_vm0, %v2254_v9  ;;  %v3131_v20 = vld [vmem:[#allocation11 + $0x4c] ss:$16 sps:$4 sm:$0xff]   ;;  %v3136_v22 = vld [vmem:[#allocation11 + $0x48] ss:$16 sps:$4 sm:$0xff]   ;;  %v3147_v25 = vld [vmem:[#allocation11 + $0x60] ss:$16 sps:$4 sm:$0xff]  }
  0xdf   : > { %924 = vmatpush1.bf16.msra.mxu0 %v3106_v12  ;;  %965 = vmatpush1.bf16.msra.mxu1 %v3109_v13  ;;  %v3143_v24 = vld [vmem:[#allocation11 + $0x6c] ss:$16 sps:$4 sm:$0xff]   ;;  %v3150_v26 = vld [vmem:[#allocation11 + $0x68] ss:$16 sps:$4 sm:$0xff]   ;;  %v3155_v27 = vld [vmem:[#allocation11 + $0x84] ss:$16 sps:$4 sm:$0xff]  }
  0xe0   : > { %925 = vmatprep.subr.bf16.mxu0 %v3113_v14  ;;  %966 = vmatprep.subr.bf16.mxu1 %v3117_v15  ;;  %v3159_v28 = vld [vmem:[#allocation11 + $0x8c] ss:$16 sps:$4 sm:$0xff]   ;;  %v2280_v29 = vld [vmem:[%s3078_s8 + $0x10] sm:$0xff]   ;;  %v3167_v31 = vld [vmem:[#allocation11 + $0x88] ss:$16 sps:$4 sm:$0xff]   ;;  %v481_v59 = vsub.s32 2, %v472_v50 }
  0xe1   : > { %586 = vmatprep.mubr.bf16.mxu0 %v3740_v6  ;;  %659 = vmatprep.mubr.bf16.mxu1 %v3740_v6  ;;  %v3163_v30 = vld [vmem:[#allocation11 + $0x80] ss:$16 sps:$4 sm:$0xff]   ;;  %v3169_v32 = vld [vmem:[#allocation11 + $0xa4] ss:$16 sps:$4 sm:$0xff]   ;;  %v3172_v33 = vld [vmem:[#allocation11 + $0xac] ss:$16 sps:$4 sm:$0xff]  }
  0xe2   : > { %v3177_v34 = vld [vmem:[#allocation11 + $0xa0] ss:$16 sps:$4 sm:$0xff]   ;;  %v3179_v35 = vld [vmem:[#allocation11 + $0xa8] ss:$16 sps:$4 sm:$0xff]   ;;  %v3184_v36 = vld [vmem:[#allocation11 + $0xc4] ss:$16 sps:$4 sm:$0xff]  }
  0xe3   : > { %926 = vmatpush1.bf16.msra.mxu0 %v3119_v16  ;;  %967 = vmatpush1.bf16.msra.mxu1 %v3121_v17  ;;  %v3188_v37 = vld [vmem:[#allocation11 + $0xcc] ss:$16 sps:$4 sm:$0xff]   ;;  %v3192_v39 = vld [vmem:[#allocation11 + $0xc0] ss:$16 sps:$4 sm:$0xff]   ;;  %v3196_v40 = vld [vmem:[#allocation11 + $0xc8] ss:$16 sps:$4 sm:$0xff]  }
  0xe4   : > { %927 = vmatprep.subr.bf16.mxu0 %v3128_v19  ;;  %968 = vmatprep.subr.bf16.mxu1 %v3131_v20  ;;  %v2293_v38 = vld [vmem:[%s3078_s8 + $0x18] sm:$0xff]   ;;  %v3198_v41 = vld [vmem:[#allocation11 + $0xe4] ss:$16 sps:$4 sm:$0xff]   ;;  %v3206_v43 = vld [vmem:[#allocation11 + $0xe0] ss:$16 sps:$4 sm:$0xff]   ;;  %v477_v62 = vsub.s32 1, %v472_v50 }
  0xe5   : > { %v3201_v42 = vld [vmem:[#allocation11 + $0xec] ss:$16 sps:$4 sm:$0xff]   ;;  %v754_v44 = vld [vmem:[#allocation15] sm:$0xff]  ;;  %v469_v61 = vld [vmem:[#allocation12] sm:$0xf]  ;;  %v485_v63 = vsub.s32 3, %v472_v50 }
  0xe6   : > { %2051 = vmatmul.mubr.msk.bf16.gmra.mrb[4].mxu0 %vm531_vm0, %v2267_v18  ;;  %2055 = vmatmul.mubr.msk.bf16.gmra.mrb[4].mxu1 %vm531_vm0, %v2267_v18  ;;  %v3211_v45 = vld [vmem:[#allocation11 + $0xe8] ss:$16 sps:$4 sm:$0xff]   ;;  %v762_v46 = vpack.c.bf16 %v754_v44, %v754_v44  ;;  %v755_v47 = vld [vmem:[#allocation15 + $0x8] sm:$0xff]  ;;  %v3303_v0 = vrot.slane %v469_v61, %v473_v57  ;;  %v3305_v1 = vrot.slane %v469_v61, %v481_v59  ;;  %s2753_s12 = smov [#allocation15]   ;;  %s2109_s22 = sshll.u32 %s2730_s30, 9 }
  0xe7   : > { %928 = vmatpush1.bf16.msra.mxu0 %v3134_v21  ;;  %596 = vmatprep.mubr.bf16.mxu0 %v3740_v6  ;;  %v1033_v48 = vpack.c.bf16 %v755_v47, %v755_v47  ;;  %v3307_v2 = vrot.slane %v469_v61, %v477_v62  ;;  %v3309_v3 = vrot.slane %v469_v61, %v485_v63  ;;  %s1840_s13 = sshll.u32 %s2753_s12, 4  ;;  %s1824_s17 = sshll.u32 %s3096_s2, 4  ;;  %s3609_s13 = int_to_ptr.vmem [resolvable:$true] %s1840_s13  ;;  %s3618_s17 = int_to_ptr.vmem [resolvable:$true] %s1824_s17 }
  0xe8   : > { %969 = vmatpush1.bf16.msra.mxu1 %v3136_v22  ;;  %929 = vmatprep.subr.bf16.mxu0 %v3140_v23  ;;  %s2754_s25 = smov [#allocation17]   ;;  %s3616_s19 = scalar_lea.hbm %s3726_s6, %s2109_s22 }
  0xe9   : > { %970 = vmatprep.subr.bf16.mxu1 %v3143_v24  ;;  %669 = vmatprep.mubr.bf16.mxu1 %v3740_v6  ;;  %s1856_s16 = sshll.u32 %s2754_s25, 4  ;;  %s2588_s21 = scalar_lea.vmem %s3609_s13, 256  ;;  %s3620_s16 = int_to_ptr.vmem [resolvable:$true] %s1856_s16 }
  0xea   : > { %p2589_p7 = scmp.ne.s32.totalorder %s3609_s13, %s2588_s21  ;;  %p3811_p10 = scmp.ne.s32.totalorder %s3759_s14, 0 }
  0xeb   : > { %930 = vmatpush1.bf16.msra.mxu0 %v3147_v25  ;;  %p2595_p4 = scmp.lt.s32.totalorder %s3609_s13, %s3609_s13  ;;  %p2596_p9 = scmp.lt.s32.totalorder %s2588_s21, %s2588_s21 }
  0xec   : > { %971 = vmatpush1.bf16.msra.mxu1 %v3150_v26  ;;  %931 = vmatprep.subr.bf16.mxu0 %v3155_v27  ;;  %p2590_p11 = pnand %p2589_p7, %p3811_p10 }
  0xed   : > { %972 = vmatprep.subr.bf16.mxu1 %v3159_v28  ;;  %p2597_p8 = por %p2596_p9, %p2595_p4 }
  0xee   : > { %2052 = vmatmul.mubr.msk.bf16.gmra.mrb[8].mxu0 %vm531_vm0, %v2280_v29  ;;  %2056 = vmatmul.mubr.msk.bf16.gmra.mrb[8].mxu1 %vm531_vm0, %v2280_v29  ;;  %p2591_p3 = pneg %p2590_p11 }
  0xef   : > { %932 = vmatpush1.bf16.msra.mxu0 %v3163_v30  ;;  %606 = vmatprep.mubr.bf16.mxu0 %v3740_v6 }
  0xf0   : > { %973 = vmatpush1.bf16.msra.mxu1 %v3167_v31  ;;  %933 = vmatprep.subr.bf16.mxu0 %v3169_v32  ;;  %p2598_p1 = pnand %p2597_p8, %p2591_p3 }
  0xf1   : > { %974 = vmatprep.subr.bf16.mxu1 %v3172_v33  ;;  %679 = vmatprep.mubr.bf16.mxu1 %v3740_v6 }
  0xf3   : > { %934 = vmatpush1.bf16.msra.mxu0 %v3177_v34 }
  0xf4   : > { %975 = vmatpush1.bf16.msra.mxu1 %v3179_v35  ;;  %935 = vmatprep.subr.bf16.mxu0 %v3184_v36 }
  0xf5   : > { %976 = vmatprep.subr.bf16.mxu1 %v3188_v37 }
  0xf6   : > { %2053 = vmatmul.mubr.msk.bf16.gmra.mrb[12].mxu0 %vm531_vm0, %v2293_v38  ;;  %2057 = vmatmul.mubr.msk.bf16.gmra.mrb[12].mxu1 %vm531_vm0, %v2293_v38 }
  0xf7   : > { %936 = vmatpush1.bf16.msra.mxu0 %v3192_v39  ;;  %955 = vmatprep.mubr.bf16.mxu0 %v3740_v6 }
  0xf8   : > { %977 = vmatpush1.bf16.msra.mxu1 %v3196_v40  ;;  %937 = vmatprep.subr.bf16.mxu0 %v3198_v41 }
  0xf9   : > { %978 = vmatprep.subr.bf16.mxu1 %v3201_v42  ;;  %996 = vmatprep.mubr.bf16.mxu1 %v3740_v6 }
  0xfb   : > { %938 = vmatpush1.bf16.msra.mxu0 %v3206_v43 }
  0xfc   : > { %979 = vmatpush1.bf16.msra.mxu1 %v3211_v45  ;;  %1034 = vmatprep.subr.bf16.mxu0 %v3102_v10 }
  0xfd   : > { %1075 = vmatprep.subr.bf16.mxu1 %v3104_v11 }
  0xfe   : > { %956 = vmatmul.mubr.bf16.vlgmr.msra.gmra.mrb[16].mxu0 %v762_v46 }
  0xff   : > { %997 = vmatmul.mubr.bf16.vlgmr.msra.gmra.mrb[16].mxu1 %v762_v46  ;;  %1035 = vmatpush1.bf16.msra.mxu0 %v3106_v12 }
 0x100   : > { %1076 = vmatpush1.bf16.msra.mxu1 %v3109_v13  ;;  %1036 = vmatprep.subr.bf16.mxu0 %v3113_v14 }
 0x101   : > { %1077 = vmatprep.subr.bf16.mxu1 %v3117_v15  ;;  %1066 = vmatprep.mubr.bf16.mxu0 %v3740_v6 }
 0x102   : > { %1107 = vmatprep.mubr.bf16.mxu1 %v3740_v6 }
 0x103   : > { %1037 = vmatpush1.bf16.msra.mxu0 %v3119_v16 }
 0x104   : > { %1078 = vmatpush1.bf16.msra.mxu1 %v3121_v17  ;;  %1038 = vmatprep.subr.bf16.mxu0 %v3128_v19 }
 0x105   : > { %1079 = vmatprep.subr.bf16.mxu1 %v3131_v20 }
 0x107   : > { %1039 = vmatpush1.bf16.msra.mxu0 %v3134_v21 }
 0x108   : > { %1080 = vmatpush1.bf16.msra.mxu1 %v3136_v22  ;;  %1040 = vmatprep.subr.bf16.mxu0 %v3140_v23 }
 0x109   : > { %1081 = vmatprep.subr.bf16.mxu1 %v3143_v24 }
 0x10b   : > { %1041 = vmatpush1.bf16.msra.mxu0 %v3147_v25 }
 0x10c   : > { %1082 = vmatpush1.bf16.msra.mxu1 %v3150_v26  ;;  %1042 = vmatprep.subr.bf16.mxu0 %v3155_v27 }
 0x10d   : > { %1083 = vmatprep.subr.bf16.mxu1 %v3159_v28 }
 0x10f   : > { %1043 = vmatpush1.bf16.msra.mxu0 %v3163_v30 }
 0x110   : > { %1084 = vmatpush1.bf16.msra.mxu1 %v3167_v31  ;;  %1044 = vmatprep.subr.bf16.mxu0 %v3169_v32 }
 0x111   : > { %1085 = vmatprep.subr.bf16.mxu1 %v3172_v33 }
 0x113   : > { %1045 = vmatpush1.bf16.msra.mxu0 %v3177_v34 }
 0x114   : > { %1086 = vmatpush1.bf16.msra.mxu1 %v3179_v35  ;;  %1046 = vmatprep.subr.bf16.mxu0 %v3184_v36 }
 0x115   : > { %1087 = vmatprep.subr.bf16.mxu1 %v3188_v37 }
 0x117   : > { %1047 = vmatpush1.bf16.msra.mxu0 %v3192_v39 }
 0x118   : > { %1088 = vmatpush1.bf16.msra.mxu1 %v3196_v40  ;;  %1048 = vmatprep.subr.bf16.mxu0 %v3198_v41 }
 0x119   : > { %1089 = vmatprep.subr.bf16.mxu1 %v3201_v42 }
 0x11b   : > { %1049 = vmatpush1.bf16.msra.mxu0 %v3206_v43 }
 0x11c   : > { %1090 = vmatpush1.bf16.msra.mxu1 %v3211_v45  ;;  %1144 = vmatprep.subr.bf16.mxu0 %v3102_v10 }
 0x11d   : > { %1185 = vmatprep.subr.bf16.mxu1 %v3104_v11 }
 0x11e   : > { %1067 = vmatmul.mubr.bf16.vlgmr.msra.gmra.mrb[20].mxu0 %v1033_v48 }
 0x11f   : > { %1108 = vmatmul.mubr.bf16.vlgmr.msra.gmra.mrb[20].mxu1 %v1033_v48  ;;  %1145 = vmatpush1.bf16.msra.mxu0 %v3106_v12 }
 0x120   : > { %1186 = vmatpush1.bf16.msra.mxu1 %v3109_v13  ;;  %1146 = vmatprep.subr.bf16.mxu0 %v3113_v14 }
 0x121   : > { %1187 = vmatprep.subr.bf16.mxu1 %v3117_v15  ;;  %1176 = vmatprep.mubr.bf16.mxu0 %v3740_v6 }
 0x122   : > { %1217 = vmatprep.mubr.bf16.mxu1 %v3740_v6 }
 0x123   : > { %1147 = vmatpush1.bf16.msra.mxu0 %v3119_v16 }
 0x124   : > { %1188 = vmatpush1.bf16.msra.mxu1 %v3121_v17  ;;  %1148 = vmatprep.subr.bf16.mxu0 %v3128_v19 }
 0x125   : > { %1189 = vmatprep.subr.bf16.mxu1 %v3131_v20 }
 0x127   : > { %1149 = vmatpush1.bf16.msra.mxu0 %v3134_v21 }
 0x128   : > { %1190 = vmatpush1.bf16.msra.mxu1 %v3136_v22  ;;  %1150 = vmatprep.subr.bf16.mxu0 %v3140_v23 }
 0x129   : > { %1191 = vmatprep.subr.bf16.mxu1 %v3143_v24 }
 0x12b   : > { %1151 = vmatpush1.bf16.msra.mxu0 %v3147_v25 }
 0x12c   : > { %1192 = vmatpush1.bf16.msra.mxu1 %v3150_v26  ;;  %1152 = vmatprep.subr.bf16.mxu0 %v3155_v27 }
 0x12d   : > { %1193 = vmatprep.subr.bf16.mxu1 %v3159_v28 }
 0x12f   : > { %1153 = vmatpush1.bf16.msra.mxu0 %v3163_v30 }
 0x130   : > { %1194 = vmatpush1.bf16.msra.mxu1 %v3167_v31  ;;  %1154 = vmatprep.subr.bf16.mxu0 %v3169_v32 }
 0x131   : > { %1195 = vmatprep.subr.bf16.mxu1 %v3172_v33 }
 0x133   : > { %1155 = vmatpush1.bf16.msra.mxu0 %v3177_v34 }
 0x134   : > { %1196 = vmatpush1.bf16.msra.mxu1 %v3179_v35  ;;  %1156 = vmatprep.subr.bf16.mxu0 %v3184_v36 }
 0x135   : > { %1197 = vmatprep.subr.bf16.mxu1 %v3188_v37 }
 0x137   : > { %1157 = vmatpush1.bf16.msra.mxu0 %v3192_v39 }
 0x138   : > { %1198 = vmatpush1.bf16.msra.mxu1 %v3196_v40  ;;  %1158 = vmatprep.subr.bf16.mxu0 %v3198_v41 }
 0x139   : > { %1199 = vmatprep.subr.bf16.mxu1 %v3201_v42 }
 0x13b   : > { %1159 = vmatpush1.bf16.msra.mxu0 %v3206_v43 }
 0x13c   : > { %1200 = vmatpush1.bf16.msra.mxu1 %v3211_v45  ;;  %1255 = vmatprep.subr.bf16.mxu0 %v3102_v10 }
 0x13d   : > { %1296 = vmatprep.subr.bf16.mxu1 %v3104_v11 }
 0x1b1   : > { %v3287_v51 = vpop.f32.mrb[0].mxu0  ;;  %v3289_v52 = vpop.f32.mrb[0].mxu1 }
 0x1b2   : > { %v3291_v53 = vpop.f32.mrb[1].mxu0  ;;  %v3293_v54 = vpop.f32.mrb[1].mxu1 }
 0x1b3   : > { %v3295_v55 = vpop.f32.mrb[2].mxu0  ;;  %v3297_v56 = vpop.f32.mrb[2].mxu1 }
 0x1b4   : > { %v3299_v58 = vpop.f32.mrb[3].mxu0  ;;  %v3301_v60 = vpop.f32.mrb[3].mxu1 }
 0x1b9   : > { %v588_v4 = vpop.f32.mrb[4].mxu0  ;;  %v661_v5 = vpop.f32.mrb[4].mxu1 }
 0x1ba   : > { %v3312_v7 = vadd.f32 %v588_v4, %v3303_v0  ;;  %v590_v8 = vpop.f32.mrb[5].mxu0  ;;  %v3315_v9 = vadd.f32 %v661_v5, %v3305_v1  ;;  %v663_v18 = vpop.f32.mrb[5].mxu1 }
 0x1bb   : > { %v3318_v29 = vadd.f32 %v590_v8, %v3307_v2  ;;  %v592_v38 = vpop.f32.mrb[6].mxu0  ;;  %v3321_v44 = vadd.f32 %v663_v18, %v3309_v3  ;;  %v665_v46 = vpop.f32.mrb[6].mxu1 }
 0x1bc   : > { %v3324_v47 = vadd.f32 %v592_v38, %v3303_v0  ;;  %v594_v48 = vpop.f32.mrb[7].mxu0  ;;  %v3327_v49 = vadd.f32 %v665_v46, %v3305_v1  ;;  %v667_v50 = vpop.f32.mrb[7].mxu1 }
 0x1bd   : > { %3766 = vst [vmem:[#allocation24_spill] sm:$0xff] %v3318_v29  ;;  %3767 = vst [vmem:[#allocation25_spill] sm:$0xff] %v3321_v44  ;;  %v3330_v57 = vadd.f32 %v594_v48, %v3307_v2  ;;  %v3333_v59 = vadd.f32 %v667_v50, %v3309_v3 }
 0x1be   : > { %3768 = vst [vmem:[#allocation26_spill] sm:$0xff] %v3324_v47  ;;  %3769 = vst [vmem:[#allocation27_spill] sm:$0xff] %v3327_v49 }
 0x1bf   : > { %3770 = vst [vmem:[#allocation28_spill] sm:$0xff] %v3330_v57  ;;  %3771 = vst [vmem:[#allocation29_spill] sm:$0xff] %v3333_v59 }
 0x1c1   : > { %v598_v61 = vpop.f32.mrb[8].mxu0  ;;  %v671_v62 = vpop.f32.mrb[8].mxu1 }
 0x1c2   : > { %v3336_v63 = vadd.f32 %v598_v61, %v3303_v0  ;;  %v600_v4 = vpop.f32.mrb[9].mxu0  ;;  %v3339_v5 = vadd.f32 %v671_v62, %v3305_v1  ;;  %v673_v8 = vpop.f32.mrb[9].mxu1 }
 0x1c3   : > { %v3342_v18 = vadd.f32 %v600_v4, %v3307_v2  ;;  %v602_v38 = vpop.f32.mrb[10].mxu0  ;;  %v3345_v46 = vadd.f32 %v673_v8, %v3309_v3  ;;  %v675_v48 = vpop.f32.mrb[10].mxu1 }
 0x1c4   : > { %3772 = vst [vmem:[#allocation30_spill] sm:$0xff] %v3336_v63  ;;  %3773 = vst [vmem:[#allocation31_spill] sm:$0xff] %v3339_v5  ;;  %v3348_v50 = vadd.f32 %v602_v38, %v3303_v0  ;;  %v604_v6 = vpop.f32.mrb[11].mxu0  ;;  %v3351_v61 = vadd.f32 %v675_v48, %v3305_v1  ;;  %v677_v63 = vpop.f32.mrb[11].mxu1 }
 0x1c5   : > { %3774 = vst [vmem:[#allocation32_spill] sm:$0xff] %v3342_v18  ;;  %3775 = vst [vmem:[#allocation33_spill] sm:$0xff] %v3345_v46  ;;  %v3354_v62 = vadd.f32 %v604_v6, %v3307_v2  ;;  %v3357_v5 = vadd.f32 %v677_v63, %v3309_v3 }
 0x1c6   : > { %3776 = vst [vmem:[#allocation34_spill] sm:$0xff] %v3348_v50  ;;  %3777 = vst [vmem:[#allocation35_spill] sm:$0xff] %v3351_v61 }
 0x1c7   : > { %3778 = vst [vmem:[#allocation36_spill] sm:$0xff] %v3354_v62  ;;  %3779 = vst [vmem:[#allocation37_spill] sm:$0xff] %v3357_v5 }
 0x1c9   : > { %v608_v4 = vpop.f32.mrb[12].mxu0  ;;  %v681_v18 = vpop.f32.mrb[12].mxu1 }
 0x1ca   : > { %v3360_v8 = vadd.f32 %v608_v4, %v3303_v0  ;;  %v610_v46 = vpop.f32.mrb[13].mxu0  ;;  %v3363_v38 = vadd.f32 %v681_v18, %v3305_v1  ;;  %v683_v50 = vpop.f32.mrb[13].mxu1 }
 0x1cb   : > { %v3366_v48 = vadd.f32 %v610_v46, %v3307_v2  ;;  %v612_v61 = vpop.f32.mrb[14].mxu0  ;;  %v3369_v6 = vadd.f32 %v683_v50, %v3309_v3  ;;  %v685_v62 = vpop.f32.mrb[14].mxu1  ;;  %v579_v46 = vadd.f32 %v3287_v51, %v3303_v0  ;;  %v581_v50 = vadd.f32 %v3291_v53, %v3307_v2 }
 0x1cc   : > { %3780 = vst [vmem:[#allocation38_spill] sm:$0xff] %v3360_v8  ;;  %3781 = vst [vmem:[#allocation39_spill] sm:$0xff] %v3363_v38  ;;  %v3372_v63 = vadd.f32 %v612_v61, %v3303_v0  ;;  %v614_v5 = vpop.f32.mrb[15].mxu0  ;;  %v3375_v4 = vadd.f32 %v685_v62, %v3305_v1  ;;  %v687_v8 = vpop.f32.mrb[15].mxu1  ;;  %v652_v61 = vadd.f32 %v3289_v52, %v3305_v1 }
 0x1cd   : > { %3782 = vst [vmem:[#allocation40_spill] sm:$0xff] %v3366_v48  ;;  %3783 = vst [vmem:[#allocation41_spill] sm:$0xff] %v3369_v6  ;;  %v3378_v18 = vadd.f32 %v614_v5, %v3307_v2  ;;  %v3381_v38 = vadd.f32 %v687_v8, %v3309_v3  ;;  %v654_v62 = vadd.f32 %v3293_v54, %v3309_v3 }
 0x1ce   : > { %3784 = vst [vmem:[#allocation42_spill] sm:$0xff] %v3372_v63  ;;  %3785 = vst [vmem:[#allocation43_spill] sm:$0xff] %v3375_v4 }
 0x1cf   : > { %3786 = vst [vmem:[#allocation44_spill] sm:$0xff] %v3378_v18  ;;  %3787 = vst [vmem:[#allocation45_spill] sm:$0xff] %v3381_v38 }
 0x1d1   : > { %v957_v63 = vpop.f32.mrb[16].mxu0 }
 0x1d2   : > { %v1005_v4 = vadd.f32 %v957_v63, %v579_v46  ;;  %v998_v6 = vpop.f32.mrb[16].mxu1  ;;  %v959_v5 = vpop.f32.mrb[17].mxu0 }
 0x1d3   : > { %v1007_v18 = vadd.f32 %v998_v6, %v652_v61  ;;  %v1006_v48 = vadd.f32 %v959_v5, %v581_v50  ;;  %v1000_v8 = vpop.f32.mrb[17].mxu1  ;;  %v961_v38 = vpop.f32.mrb[18].mxu0  ;;  %v756_v50 = vld [vmem:[#allocation17] sm:$0xff] }
 0x1d4   : > { %v1009_v59 = vmul.f32 0.5, %v1005_v4  ;;  %v1008_v57 = vadd.f32 %v1000_v8, %v654_v62  ;;  %v962_v51 = vpop.f32.mrb[19].mxu0  ;;  %v1002_v49 = vpop.f32.mrb[18].mxu1 }
 0x1d5   : > { %v1010_v47 = vmul.f32 0.5, %v1006_v48  ;;  %v1003_v53 = vpop.f32.mrb[19].mxu1  ;;  %v1011_v52 = vmul.f32 0.5, %v1007_v18  ;;  %v658_v48 = vadd.f32 %v3301_v60, %v3309_v3  ;;  %v3788_v3 = vmov 0  }
 0x1d6   : > { %2306 = vtanh.f32 %v1009_v59 }
 0x1d7   : > { %2308 = vtanh.f32 %v1010_v47  ;;  %v583_v47 = vadd.f32 %v3295_v55, %v3303_v0 }
 0x1d8   : > { %2310 = vtanh.f32 %v1008_v57 }
 0x1d9   : > { %2312 = vtanh.f32 %v1011_v52 }
 0x1e0   : > { %v2307_v44 = vpop.eup %2306 }
 0x1e1   : > { %v1015_v29 = vmul.f32 0.5, %v2307_v44  ;;  %v2309_v54 = vpop.eup %2308  ;;  %v585_v44 = vadd.f32 %v3299_v58, %v3307_v2 }
 0x1e2   : > { %v1016_v46 = vmul.f32 0.5, %v2309_v54  ;;  %v2311_v6 = vpop.eup %2310 }
 0x1e3   : > { %v1018_v63 = vadd.f32 0.5, %v1015_v29  ;;  %v2313_v49 = vpop.eup %2312  ;;  %v656_v29 = vadd.f32 %v3297_v56, %v3305_v1 }
 0x1e4   : > { %v1019_v61 = vadd.f32 0.5, %v1016_v46  ;;  %v1017_v57 = vmul.f32 0.5, %v2313_v49 }
 0x1e5   : > { %v1023_v38 = vmul.f32 %v2311_v6, %v1018_v63 }
 0x1e6   : > { %v1022_v4 = vmul.f32 %v1019_v61, %v756_v50  ;;  %v1020_v55 = vadd.f32 0.5, %v1017_v57 }
 0x1e8   : > { %v3391_v62 = vadd.f32 %v1023_v38, %v1022_v4 }
 0x1ea   : > { %2314 = vtanh.f32 %v3391_v62 }
 0x1f1   : > { %v1068_v59 = vpop.f32.mrb[20].mxu0 }
 0x1f2   : > { %v1116_v18 = vadd.f32 %v1068_v59, %v583_v47  ;;  %v1109_v5 = vpop.f32.mrb[20].mxu1  ;;  %v1070_v8 = vpop.f32.mrb[21].mxu0 }
 0x1f3   : > { %v1118_v51 = vadd.f32 %v1109_v5, %v656_v29  ;;  %v1117_v53 = vadd.f32 %v1070_v8, %v585_v44  ;;  %v1111_v52 = vpop.f32.mrb[21].mxu1  ;;  %v1072_v54 = vpop.f32.mrb[22].mxu0  ;;  %v757_v44 = vld [vmem:[#allocation17 + $0x8] sm:$0xff] }
 0x1f4   : > { %v1120_v0 = vmul.f32 0.5, %v1116_v18  ;;  %v1119_v63 = vadd.f32 %v1111_v52, %v658_v48  ;;  %v1073_v46 = vpop.f32.mrb[23].mxu0  ;;  %v1113_v58 = vpop.f32.mrb[22].mxu1 }
 0x1f5   : > { %v2315_v2 = vpop.eup %2314  ;;  %v1121_v6 = vmul.f32 0.5, %v1117_v53  ;;  %v1114_v56 = vpop.f32.mrb[23].mxu1  ;;  %v1122_v50 = vmul.f32 0.5, %v1118_v51 }
 0x1f6   : > { %2316 = vtanh.f32 %v1120_v0  ;;  %v1026_v1 = vmul.f32 %v2315_v2, %v1020_v55 }
 0x1f7   : > { %2318 = vtanh.f32 %v1121_v6  ;;  %v3789_v6 = vld [vmem:[#allocation24_spill] sm:$0xff] }
 0x1f8   : > { %v1027_v60 = vpack.c.bf16 %v1026_v1, %v1026_v1  ;;  %2320 = vtanh.f32 %v1119_v63  ;;  %v3790_v1 = vld [vmem:[#allocation25_spill] sm:$0xff] }
 0x1f9   : > { %2322 = vtanh.f32 %v1122_v50 }
 0x1fa   : > { %1028 = vst [vmem:[%s3096_s2] sm:$0xf] %v1027_v60  ;;  %1177 = vmatmul.mubr.bf16.vlgmr.msra.gmra.mrb[24].mxu0 %v1027_v60  ;;  %1218 = vmatmul.mubr.bf16.vlgmr.msra.gmra.mrb[24].mxu1 %v1027_v60 }
 0x1fb   : > { %1256 = vmatpush1.bf16.msra.mxu0 %v3106_v12  ;;  %1297 = vmatpush1.bf16.msra.mxu1 %v3109_v13 }
 0x1fc   : > { %1257 = vmatprep.subr.bf16.mxu0 %v3113_v14  ;;  %1298 = vmatprep.subr.bf16.mxu1 %v3117_v15 }
 0x1fd   : > { %1287 = vmatprep.mubr.bf16.mxu0 %v3788_v3  ;;  %1328 = vmatprep.mubr.bf16.mxu1 %v3788_v3 }
 0x1ff   : > { %1258 = vmatpush1.bf16.msra.mxu0 %v3119_v16  ;;  %1299 = vmatpush1.bf16.msra.mxu1 %v3121_v17 }
 0x200   : > { %v2317_v61 = vpop.eup %2316  ;;  %1259 = vmatprep.subr.bf16.mxu0 %v3128_v19  ;;  %1300 = vmatprep.subr.bf16.mxu1 %v3131_v20 }
 0x201   : > { %v1126_v38 = vmul.f32 0.5, %v2317_v61  ;;  %v2319_v4 = vpop.eup %2318 }
 0x202   : > { %v1127_v47 = vmul.f32 0.5, %v2319_v4  ;;  %v2321_v57 = vpop.eup %2320 }
 0x203   : > { %v1129_v49 = vadd.f32 0.5, %v1126_v38  ;;  %1260 = vmatpush1.bf16.msra.mxu0 %v3134_v21  ;;  %1301 = vmatpush1.bf16.msra.mxu1 %v3136_v22  ;;  %v2323_v5 = vpop.eup %2322 }
 0x204   : > { %1261 = vmatprep.subr.bf16.mxu0 %v3140_v23  ;;  %1302 = vmatprep.subr.bf16.mxu1 %v3143_v24  ;;  %v1130_v29 = vadd.f32 0.5, %v1127_v47  ;;  %v1128_v8 = vmul.f32 0.5, %v2323_v5 }
 0x205   : > { %v1134_v59 = vmul.f32 %v2321_v57, %v1129_v49 }
 0x206   : > { %v1133_v48 = vmul.f32 %v1130_v29, %v757_v44  ;;  %v1131_v51 = vadd.f32 0.5, %v1128_v8 }
 0x207   : > { %1262 = vmatpush1.bf16.msra.mxu0 %v3147_v25  ;;  %1303 = vmatpush1.bf16.msra.mxu1 %v3150_v26 }
 0x208   : > { %1263 = vmatprep.subr.bf16.mxu0 %v3155_v27  ;;  %1304 = vmatprep.subr.bf16.mxu1 %v3159_v28  ;;  %v3421_v18 = vadd.f32 %v1134_v59, %v1133_v48 }
 0x20a   : > { %2324 = vtanh.f32 %v3421_v18 }
 0x20b   : > { %1264 = vmatpush1.bf16.msra.mxu0 %v3163_v30  ;;  %1305 = vmatpush1.bf16.msra.mxu1 %v3167_v31 }
 0x20c   : > { %1265 = vmatprep.subr.bf16.mxu0 %v3169_v32  ;;  %1306 = vmatprep.subr.bf16.mxu1 %v3172_v33 }
 0x20f   : > { %1266 = vmatpush1.bf16.msra.mxu0 %v3177_v34  ;;  %1307 = vmatpush1.bf16.msra.mxu1 %v3179_v35 }
 0x210   : > { %1267 = vmatprep.subr.bf16.mxu0 %v3184_v36  ;;  %1308 = vmatprep.subr.bf16.mxu1 %v3188_v37 }
 0x213   : > { %1268 = vmatpush1.bf16.msra.mxu0 %v3192_v39  ;;  %1309 = vmatpush1.bf16.msra.mxu1 %v3196_v40 }
 0x214   : > { %1269 = vmatprep.subr.bf16.mxu0 %v3198_v41  ;;  %1310 = vmatprep.subr.bf16.mxu1 %v3201_v42  ;;  %v2325_v53 = vpop.eup %2324 }
 0x215   : > { %v1137_v52 = vmul.f32 %v2325_v53, %v1131_v51 }
 0x217   : > { %1270 = vmatpush1.bf16.msra.mxu0 %v3206_v43  ;;  %1311 = vmatpush1.bf16.msra.mxu1 %v3211_v45  ;;  %v1138_v54 = vpack.c.bf16 %v1137_v52, %v1137_v52 }
 0x218   : > { %1365 = vmatprep.subr.bf16.mxu0 %v3102_v10  ;;  %1406 = vmatprep.subr.bf16.mxu1 %v3104_v11 }
 0x219   : > { %1139 = vst [vmem:[%s3096_s2 + $0x4] sm:$0xf] %v1138_v54 }
 0x21a   : > { %1288 = vmatmul.mubr.bf16.vlgmr.msra.gmra.mrb[28].mxu0 %v1138_v54  ;;  %1329 = vmatmul.mubr.bf16.vlgmr.msra.gmra.mrb[28].mxu1 %v1138_v54 }
 0x21b   : > { %1366 = vmatpush1.bf16.msra.mxu0 %v3106_v12  ;;  %1407 = vmatpush1.bf16.msra.mxu1 %v3109_v13 }
 0x21c   : > { %1367 = vmatprep.subr.bf16.mxu0 %v3113_v14  ;;  %1408 = vmatprep.subr.bf16.mxu1 %v3117_v15 }
 0x21d   : > { %1397 = vmatprep.mubr.bf16.mxu0 %v3788_v3  ;;  %1438 = vmatprep.mubr.bf16.mxu1 %v3788_v3 }
 0x21f   : > { %1368 = vmatpush1.bf16.msra.mxu0 %v3119_v16  ;;  %1409 = vmatpush1.bf16.msra.mxu1 %v3121_v17 }
 0x220   : > { %1369 = vmatprep.subr.bf16.mxu0 %v3128_v19  ;;  %1410 = vmatprep.subr.bf16.mxu1 %v3131_v20 }
 0x223   : > { %1370 = vmatpush1.bf16.msra.mxu0 %v3134_v21  ;;  %1411 = vmatpush1.bf16.msra.mxu1 %v3136_v22 }
 0x224   : > { %1371 = vmatprep.subr.bf16.mxu0 %v3140_v23  ;;  %1412 = vmatprep.subr.bf16.mxu1 %v3143_v24 }
 0x227   : > { %1372 = vmatpush1.bf16.msra.mxu0 %v3147_v25  ;;  %1413 = vmatpush1.bf16.msra.mxu1 %v3150_v26 }
 0x228   : > { %1373 = vmatprep.subr.bf16.mxu0 %v3155_v27  ;;  %1414 = vmatprep.subr.bf16.mxu1 %v3159_v28 }
 0x22b   : > { %1374 = vmatpush1.bf16.msra.mxu0 %v3163_v30  ;;  %1415 = vmatpush1.bf16.msra.mxu1 %v3167_v31 }
 0x22c   : > { %1375 = vmatprep.subr.bf16.mxu0 %v3169_v32  ;;  %1416 = vmatprep.subr.bf16.mxu1 %v3172_v33 }
 0x22f   : > { %1376 = vmatpush1.bf16.msra.mxu0 %v3177_v34  ;;  %1417 = vmatpush1.bf16.msra.mxu1 %v3179_v35 }
 0x230   : > { %1377 = vmatprep.subr.bf16.mxu0 %v3184_v36  ;;  %1418 = vmatprep.subr.bf16.mxu1 %v3188_v37 }
 0x233   : > { %1378 = vmatpush1.bf16.msra.mxu0 %v3192_v39  ;;  %1419 = vmatpush1.bf16.msra.mxu1 %v3196_v40 }
 0x234   : > { %1379 = vmatprep.subr.bf16.mxu0 %v3198_v41  ;;  %1420 = vmatprep.subr.bf16.mxu1 %v3201_v42 }
 0x237   : > { %1380 = vmatpush1.bf16.msra.mxu0 %v3206_v43  ;;  %1421 = vmatpush1.bf16.msra.mxu1 %v3211_v45 }
 0x238   : > { %1476 = vmatprep.subr.bf16.mxu0 %v3102_v10  ;;  %1517 = vmatprep.subr.bf16.mxu1 %v3104_v11 }
 0x2cd   : > { %v1178_v55 = vpop.f32.mrb[24].mxu0  ;;  %v1219_v0 = vpop.f32.mrb[24].mxu1 }
 0x2ce   : > { %v1226_v63 = vadd.f32 %v1178_v55, %v3312_v7  ;;  %v1228_v46 = vadd.f32 %v1219_v0, %v3315_v9  ;;  %v1180_v58 = vpop.f32.mrb[25].mxu0  ;;  %v1221_v2 = vpop.f32.mrb[25].mxu1  ;;  %v3791_v55 = vld [vmem:[#allocation26_spill] sm:$0xff] }
 0x2cf   : > { %v1227_v56 = vadd.f32 %v1180_v58, %v3789_v6  ;;  %v1229_v60 = vadd.f32 %v1221_v2, %v3790_v1  ;;  %v1182_v50 = vpop.f32.mrb[26].mxu0  ;;  %v1223_v61 = vpop.f32.mrb[26].mxu1  ;;  %v3793_v6 = vld [vmem:[#allocation28_spill] sm:$0xff]  ;;  %v3794_v1 = vld [vmem:[#allocation29_spill] sm:$0xff] }
 0x2d0   : > { %v1230_v38 = vmul.f32 0.5, %v1226_v63  ;;  %v1183_v4 = vpop.f32.mrb[27].mxu0  ;;  %v1224_v49 = vpop.f32.mrb[27].mxu1  ;;  %v1232_v11 = vmul.f32 0.5, %v1228_v46  ;;  %v3792_v63 = vld [vmem:[#allocation27_spill] sm:$0xff] }
 0x2d1   : > { %v1231_v10 = vmul.f32 0.5, %v1227_v56 }
 0x2d2   : > { %2326 = vtanh.f32 %v1230_v38 }
 0x2d3   : > { %2328 = vtanh.f32 %v1231_v10 }
 0x2d4   : > { %2330 = vtanh.f32 %v1229_v60 }
 0x2d5   : > { %2332 = vtanh.f32 %v1232_v11 }
 0x2dc   : > { %v2327_v47 = vpop.eup %2326 }
 0x2dd   : > { %v1236_v7 = vmul.f32 0.5, %v2327_v47  ;;  %v2329_v57 = vpop.eup %2328 }
 0x2de   : > { %v1237_v44 = vmul.f32 0.5, %v2329_v57  ;;  %v2331_v29 = vpop.eup %2330 }
 0x2df   : > { %v1239_v9 = vadd.f32 0.5, %v1236_v7  ;;  %v2333_v51 = vpop.eup %2332 }
 0x2e0   : > { %v1240_v59 = vadd.f32 0.5, %v1237_v44  ;;  %v1238_v53 = vmul.f32 0.5, %v2333_v51 }
 0x2e1   : > { %v1244_v48 = vmul.f32 %v2331_v29, %v1239_v9 }
 0x2e2   : > { %v1243_v5 = vmul.f32 %v1240_v59, %v3391_v62  ;;  %v1241_v61 = vadd.f32 0.5, %v1238_v53 }
 0x2e4   : > { %v3480_v8 = vadd.f32 %v1244_v48, %v1243_v5 }
 0x2e6   : > { %2334 = vtanh.f32 %v3480_v8 }
 0x2ed   : > { %v1289_v52 = vpop.f32.mrb[28].mxu0  ;;  %v1330_v54 = vpop.f32.mrb[28].mxu1 }
 0x2ee   : > { %v1337_v0 = vadd.f32 %v1289_v52, %v3791_v55  ;;  %v1339_v46 = vadd.f32 %v1330_v54, %v3792_v63  ;;  %v1291_v58 = vpop.f32.mrb[29].mxu0  ;;  %v1332_v2 = vpop.f32.mrb[29].mxu1  ;;  %v2386_v52 = vld [vmem:[#allocation11 + $0x4] ss:$16 sps:$4 sm:$0xff]   ;;  %v2387_v54 = vld [vmem:[#allocation11 + $0xc] ss:$16 sps:$4 sm:$0xff]  }
 0x2ef   : > { %v1338_v56 = vadd.f32 %v1291_v58, %v3793_v6  ;;  %v1340_v60 = vadd.f32 %v1332_v2, %v3794_v1  ;;  %v1293_v62 = vpop.f32.mrb[30].mxu0  ;;  %v1334_v50 = vpop.f32.mrb[30].mxu1  ;;  %v3525_v55 = vld [vmem:[#allocation11] ss:$16 sps:$4 sm:$0xff]   ;;  %v3531_v63 = vld [vmem:[#allocation11 + $0x24] ss:$16 sps:$4 sm:$0xff]  }
 0x2f0   : > { %v1341_v38 = vmul.f32 0.5, %v1337_v0  ;;  %v1294_v4 = vpop.f32.mrb[31].mxu0  ;;  %v1335_v49 = vpop.f32.mrb[31].mxu1  ;;  %v1343_v57 = vmul.f32 0.5, %v1339_v46  ;;  %v3528_v0 = vld [vmem:[#allocation11 + $0x8] ss:$16 sps:$4 sm:$0xff]  }
 0x2f1   : > { %v2335_v10 = vpop.eup %2334  ;;  %v1342_v11 = vmul.f32 0.5, %v1338_v56  ;;  %v3534_v46 = vld [vmem:[#allocation11 + $0x2c] ss:$16 sps:$4 sm:$0xff]   ;;  %v3539_v58 = vld [vmem:[#allocation11 + $0x20] ss:$16 sps:$4 sm:$0xff]  }
 0x2f2   : > { %2336 = vtanh.f32 %v1341_v38  ;;  %v1247_v47 = vmul.f32 %v2335_v10, %v1241_v61  ;;  %v3542_v2 = vld [vmem:[#allocation11 + $0x28] ss:$16 sps:$4 sm:$0xff]   ;;  %v3545_v6 = vld [vmem:[#allocation11 + $0x44] ss:$16 sps:$4 sm:$0xff]  }
 0x2f3   : > { %2338 = vtanh.f32 %v1342_v11  ;;  %v3799_v11 = vld [vmem:[#allocation34_spill] sm:$0xff] }
 0x2f4   : > { %v1248_v7 = vpack.c.bf16 %v1247_v47, %v1247_v47  ;;  %2340 = vtanh.f32 %v1340_v60 }
 0x2f5   : > { %2342 = vtanh.f32 %v1343_v57 }
 0x2f6   : > { %2090 = vst [vmem:[%s3096_s2 + $0x8] sm:$0xf] %v1248_v7  ;;  %1398 = vmatmul.mubr.bf16.vlgmr.msra.gmra.mrb[32].mxu0 %v1248_v7  ;;  %1439 = vmatmul.mubr.bf16.vlgmr.msra.gmra.mrb[32].mxu1 %v1248_v7  ;;  %v3800_v7 = vld [vmem:[#allocation35_spill] sm:$0xff] }
 0x2f7   : > { %1477 = vmatpush1.bf16.msra.mxu0 %v3106_v12  ;;  %1518 = vmatpush1.bf16.msra.mxu1 %v3109_v13 }
 0x2f8   : > { %1478 = vmatprep.subr.bf16.mxu0 %v3113_v14  ;;  %1519 = vmatprep.subr.bf16.mxu1 %v3117_v15 }
 0x2f9   : > { %1508 = vmatprep.mubr.bf16.mxu0 %v3788_v3  ;;  %1549 = vmatprep.mubr.bf16.mxu1 %v3788_v3 }
 0x2fb   : > { %1479 = vmatpush1.bf16.msra.mxu0 %v3119_v16  ;;  %1520 = vmatpush1.bf16.msra.mxu1 %v3121_v17 }
 0x2fc   : > { %v2337_v9 = vpop.eup %2336  ;;  %1480 = vmatprep.subr.bf16.mxu0 %v3128_v19  ;;  %1521 = vmatprep.subr.bf16.mxu1 %v3131_v20 }
 0x2fd   : > { %v1347_v12 = vmul.f32 0.5, %v2337_v9  ;;  %v2339_v13 = vpop.eup %2338 }
 0x2fe   : > { %v1348_v14 = vmul.f32 0.5, %v2339_v13  ;;  %v2341_v15 = vpop.eup %2340  ;;  %v3801_v13 = vld [vmem:[#allocation36_spill] sm:$0xff] }
 0x2ff   : > { %v1350_v44 = vadd.f32 0.5, %v1347_v12  ;;  %1481 = vmatpush1.bf16.msra.mxu0 %v3134_v21  ;;  %1522 = vmatpush1.bf16.msra.mxu1 %v3136_v22 }
 0x300   : > { %1482 = vmatprep.subr.bf16.mxu0 %v3140_v23  ;;  %1523 = vmatprep.subr.bf16.mxu1 %v3143_v24  ;;  %v1351_v16 = vadd.f32 0.5, %v1348_v14  ;;  %v3802_v14 = vld [vmem:[#allocation37_spill] sm:$0xff] }
 0x301   : > { %v1355_v17 = vmul.f32 %v2341_v15, %v1350_v44 }
 0x302   : > { %v1354_v19 = vmul.f32 %v1351_v16, %v3421_v18  ;;  %v2343_v18 = vpop.eup %2342 }
 0x303   : > { %1483 = vmatpush1.bf16.msra.mxu0 %v3147_v25  ;;  %1524 = vmatpush1.bf16.msra.mxu1 %v3150_v26  ;;  %v1349_v59 = vmul.f32 0.5, %v2343_v18 }
 0x304   : > { %1484 = vmatprep.subr.bf16.mxu0 %v3155_v27  ;;  %1525 = vmatprep.subr.bf16.mxu1 %v3159_v28  ;;  %v3507_v29 = vadd.f32 %v1355_v17, %v1354_v19 }
 0x305   : > { %v1352_v48 = vadd.f32 0.5, %v1349_v59 }
 0x306   : > { %2344 = vtanh.f32 %v3507_v29 }
 0x307   : > { %1485 = vmatpush1.bf16.msra.mxu0 %v3163_v30  ;;  %1526 = vmatpush1.bf16.msra.mxu1 %v3167_v31 }
 0x308   : > { %1486 = vmatprep.subr.bf16.mxu0 %v3169_v32  ;;  %1527 = vmatprep.subr.bf16.mxu1 %v3172_v33 }
 0x30b   : > { %1487 = vmatpush1.bf16.msra.mxu0 %v3177_v34  ;;  %1528 = vmatpush1.bf16.msra.mxu1 %v3179_v35 }
 0x30c   : > { %1488 = vmatprep.subr.bf16.mxu0 %v3184_v36  ;;  %1529 = vmatprep.subr.bf16.mxu1 %v3188_v37 }
 0x30f   : > { %1489 = vmatpush1.bf16.msra.mxu0 %v3192_v39  ;;  %1530 = vmatpush1.bf16.msra.mxu1 %v3196_v40 }
 0x310   : > { %1490 = vmatprep.subr.bf16.mxu0 %v3198_v41  ;;  %1531 = vmatprep.subr.bf16.mxu1 %v3201_v42  ;;  %v2345_v5 = vpop.eup %2344 }
 0x311   : > { %v1358_v51 = vmul.f32 %v2345_v5, %v1352_v48 }
 0x313   : > { %1491 = vmatpush1.bf16.msra.mxu0 %v3206_v43  ;;  %1532 = vmatpush1.bf16.msra.mxu1 %v3211_v45  ;;  %v1359_v53 = vpack.c.bf16 %v1358_v51, %v1358_v51 }
 0x314   : > { %1586 = vmatprep.subr.bf16.mxu0 %v2386_v52  ;;  %1627 = vmatprep.subr.bf16.mxu1 %v2387_v54 }
 0x315   : > { %2091 = vst [vmem:[%s3096_s2 + $0xc] sm:$0xf] %v1359_v53 }
 0x316   : > { %1509 = vmatmul.mubr.bf16.vlgmr.msra.gmra.mrb[36].mxu0 %v1359_v53  ;;  %1550 = vmatmul.mubr.bf16.vlgmr.msra.gmra.mrb[36].mxu1 %v1359_v53 }
 0x317   : > { %1587 = vmatpush1.bf16.msra.mxu0 %v3525_v55  ;;  %1628 = vmatpush1.bf16.msra.mxu1 %v3528_v0 }
 0x318   : > { %1588 = vmatprep.subr.bf16.mxu0 %v3531_v63  ;;  %1629 = vmatprep.subr.bf16.mxu1 %v3534_v46 }
 0x319   : > { %1618 = vmatprep.mubr.bf16.mxu0 %v3788_v3  ;;  %1659 = vmatprep.mubr.bf16.mxu1 %v3788_v3 }
 0x31b   : > { %1589 = vmatpush1.bf16.msra.mxu0 %v3539_v58  ;;  %1630 = vmatpush1.bf16.msra.mxu1 %v3542_v2 }
 0x31c   : > { %1590 = vmatprep.subr.bf16.mxu0 %v3545_v6  ;;  %1631 = vmatprep.subr.bf16.mxu1 %v3131_v20 }
 0x31f   : > { %1591 = vmatpush1.bf16.msra.mxu0 %v3134_v21  ;;  %1632 = vmatpush1.bf16.msra.mxu1 %v3136_v22  ;;  %v3795_v22 = vld [vmem:[#allocation30_spill] sm:$0xff] }
 0x320   : > { %1592 = vmatprep.subr.bf16.mxu0 %v3140_v23  ;;  %1633 = vmatprep.subr.bf16.mxu1 %v3143_v24  ;;  %v3796_v24 = vld [vmem:[#allocation31_spill] sm:$0xff] }
 0x323   : > { %1593 = vmatpush1.bf16.msra.mxu0 %v3147_v25  ;;  %1634 = vmatpush1.bf16.msra.mxu1 %v3150_v26 }
 0x324   : > { %1594 = vmatprep.subr.bf16.mxu0 %v3155_v27  ;;  %1635 = vmatprep.subr.bf16.mxu1 %v3159_v28  ;;  %v3797_v28 = vld [vmem:[#allocation32_spill] sm:$0xff] }
 0x327   : > { %1595 = vmatpush1.bf16.msra.mxu0 %v3163_v30  ;;  %1636 = vmatpush1.bf16.msra.mxu1 %v3167_v31  ;;  %v3798_v31 = vld [vmem:[#allocation33_spill] sm:$0xff] }
 0x328   : > { %1596 = vmatprep.subr.bf16.mxu0 %v3169_v32  ;;  %1637 = vmatprep.subr.bf16.mxu1 %v3172_v33 }
 0x32b   : > { %1597 = vmatpush1.bf16.msra.mxu0 %v3177_v34  ;;  %1638 = vmatpush1.bf16.msra.mxu1 %v3179_v35 }
 0x32c   : > { %1598 = vmatprep.subr.bf16.mxu0 %v3184_v36  ;;  %1639 = vmatprep.subr.bf16.mxu1 %v3188_v37 }
 0x32f   : > { %1599 = vmatpush1.bf16.msra.mxu0 %v3192_v39  ;;  %1640 = vmatpush1.bf16.msra.mxu1 %v3196_v40 }
 0x330   : > { %1600 = vmatprep.subr.bf16.mxu0 %v3198_v41  ;;  %1641 = vmatprep.subr.bf16.mxu1 %v3201_v42 }
 0x333   : > { %1601 = vmatpush1.bf16.msra.mxu0 %v3206_v43  ;;  %1642 = vmatpush1.bf16.msra.mxu1 %v3211_v45 }
 0x334   : > { %1697 = vmatprep.subr.bf16.mxu0 %v2386_v52  ;;  %1738 = vmatprep.subr.bf16.mxu1 %v2387_v54 }
 0x3c9   : > { %v1399_v20 = vpop.f32.mrb[32].mxu0  ;;  %v1440_v21 = vpop.f32.mrb[32].mxu1 }
 0x3ca   : > { %v1447_v23 = vadd.f32 %v1399_v20, %v3795_v22  ;;  %v1449_v25 = vadd.f32 %v1440_v21, %v3796_v24  ;;  %v1401_v26 = vpop.f32.mrb[33].mxu0  ;;  %v1442_v27 = vpop.f32.mrb[33].mxu1  ;;  %v2395_v20 = vld [vmem:[#allocation11 + $0x4c] ss:$16 sps:$4 sm:$0xff]   ;;  %v2397_v22 = vld [vmem:[#allocation11 + $0x48] ss:$16 sps:$4 sm:$0xff]  }
 0x3cb   : > { %v1448_v30 = vadd.f32 %v1401_v26, %v3797_v28  ;;  %v1450_v32 = vadd.f32 %v1442_v27, %v3798_v31  ;;  %v1403_v33 = vpop.f32.mrb[34].mxu0  ;;  %v1444_v34 = vpop.f32.mrb[34].mxu1  ;;  %v2401_v26 = vld [vmem:[#allocation11 + $0x68] ss:$16 sps:$4 sm:$0xff]   ;;  %v2402_v27 = vld [vmem:[#allocation11 + $0x84] ss:$16 sps:$4 sm:$0xff]  }
 0x3cc   : > { %v1451_v35 = vmul.f32 0.5, %v1447_v23  ;;  %v1404_v36 = vpop.f32.mrb[35].mxu0  ;;  %v1445_v37 = vpop.f32.mrb[35].mxu1  ;;  %v1453_v40 = vmul.f32 0.5, %v1449_v25  ;;  %v2398_v23 = vld [vmem:[#allocation11 + $0x64] ss:$16 sps:$4 sm:$0xff]  }
 0x3cd   : > { %v1452_v39 = vmul.f32 0.5, %v1448_v30  ;;  %v2400_v25 = vld [vmem:[#allocation11 + $0x60] ss:$16 sps:$4 sm:$0xff]   ;;  %v2403_v28 = vld [vmem:[#allocation11 + $0x8c] ss:$16 sps:$4 sm:$0xff]  }
 0x3ce   : > { %2346 = vtanh.f32 %v1451_v35  ;;  %v2404_v31 = vld [vmem:[#allocation11 + $0x80] ss:$16 sps:$4 sm:$0xff]   ;;  %v2406_v33 = vld [vmem:[#allocation11 + $0xa4] ss:$16 sps:$4 sm:$0xff]   ;;  %v2407_v34 = vld [vmem:[#allocation11 + $0xac] ss:$16 sps:$4 sm:$0xff]  }
 0x3cf   : > { %2348 = vtanh.f32 %v1452_v39  ;;  %v2408_v35 = vld [vmem:[#allocation11 + $0xa0] ss:$16 sps:$4 sm:$0xff]   ;;  %v2409_v36 = vld [vmem:[#allocation11 + $0xa8] ss:$16 sps:$4 sm:$0xff]   ;;  %v2410_v39 = vld [vmem:[#allocation11 + $0xc4] ss:$16 sps:$4 sm:$0xff]  }
 0x3d0   : > { %2350 = vtanh.f32 %v1450_v32  ;;  %v2405_v32 = vld [vmem:[#allocation11 + $0x88] ss:$16 sps:$4 sm:$0xff]  }
 0x3d1   : > { %2352 = vtanh.f32 %v1453_v40  ;;  %v2411_v40 = vld [vmem:[#allocation11 + $0xcc] ss:$16 sps:$4 sm:$0xff]  }
 0x3d8   : > { %v2347_v41 = vpop.eup %2346 }
 0x3d9   : > { %v1457_v42 = vmul.f32 0.5, %v2347_v41  ;;  %v2349_v43 = vpop.eup %2348  ;;  %v2412_v41 = vld [vmem:[#allocation11 + $0xc0] ss:$16 sps:$4 sm:$0xff]  }
 0x3da   : > { %v1458_v56 = vmul.f32 0.5, %v2349_v43  ;;  %v2351_v1 = vpop.eup %2350 }
 0x3db   : > { %v1460_v45 = vadd.f32 0.5, %v1457_v42  ;;  %v2353_v38 = vpop.eup %2352  ;;  %v2413_v42 = vld [vmem:[#allocation11 + $0xc8] ss:$16 sps:$4 sm:$0xff]  }
 0x3dc   : > { %v1461_v60 = vadd.f32 0.5, %v1458_v56  ;;  %v1459_v4 = vmul.f32 0.5, %v2353_v38  ;;  %v2415_v56 = vld [vmem:[#allocation11 + $0xec] ss:$16 sps:$4 sm:$0xff]  }
 0x3dd   : > { %v1465_v62 = vmul.f32 %v2351_v1, %v1460_v45  ;;  %v2414_v45 = vld [vmem:[#allocation11 + $0xe4] ss:$16 sps:$4 sm:$0xff]  }
 0x3de   : > { %v1464_v50 = vmul.f32 %v1461_v60, %v3480_v8  ;;  %v1462_v17 = vadd.f32 0.5, %v1459_v4 }
 0x3e0   : > { %v3576_v61 = vadd.f32 %v1465_v62, %v1464_v50  ;;  %v2416_v62 = vld [vmem:[#allocation11 + $0xe0] ss:$16 sps:$4 sm:$0xff]   ;;  %v2417_v50 = vld [vmem:[#allocation11 + $0xe8] ss:$16 sps:$4 sm:$0xff]  }
 0x3e2   : > { %2354 = vtanh.f32 %v3576_v61 }
 0x3e9   : > { %v1510_v49 = vpop.f32.mrb[36].mxu0  ;;  %v1551_v10 = vpop.f32.mrb[36].mxu1 }
 0x3ea   : > { %v1558_v47 = vadd.f32 %v1510_v49, %v3799_v11  ;;  %v1560_v57 = vadd.f32 %v1551_v10, %v3800_v7  ;;  %v1512_v9 = vpop.f32.mrb[37].mxu0  ;;  %v1553_v12 = vpop.f32.mrb[37].mxu1  ;;  %v3803_v10 = vld [vmem:[#allocation38_spill] sm:$0xff] }
 0x3eb   : > { %v1559_v44 = vadd.f32 %v1512_v9, %v3801_v13  ;;  %v1561_v15 = vadd.f32 %v1553_v12, %v3802_v14  ;;  %v1514_v8 = vpop.f32.mrb[38].mxu0  ;;  %v1555_v16 = vpop.f32.mrb[38].mxu1  ;;  %v3805_v12 = vld [vmem:[#allocation40_spill] sm:$0xff] }
 0x3ec   : > { %v1562_v19 = vmul.f32 0.5, %v1558_v47  ;;  %v1515_v18 = vpop.f32.mrb[39].mxu0  ;;  %v1556_v59 = vpop.f32.mrb[39].mxu1  ;;  %v1564_v52 = vmul.f32 0.5, %v1560_v57  ;;  %v3804_v47 = vld [vmem:[#allocation39_spill] sm:$0xff] }
 0x3ed   : > { %v2355_v48 = vpop.eup %2354  ;;  %v1563_v5 = vmul.f32 0.5, %v1559_v44  ;;  %v3806_v44 = vld [vmem:[#allocation41_spill] sm:$0xff] }
 0x3ee   : > { %2356 = vtanh.f32 %v1562_v19  ;;  %v1468_v51 = vmul.f32 %v2355_v48, %v1462_v17 }
 0x3ef   : > { %2358 = vtanh.f32 %v1563_v5 }
 0x3f0   : > { %v1469_v53 = vpack.c.bf16 %v1468_v51, %v1468_v51  ;;  %2360 = vtanh.f32 %v1561_v15 }
 0x3f1   : > { %2362 = vtanh.f32 %v1564_v52 }
 0x3f2   : > { %2092 = vst [vmem:[%s3096_s2 + $0x10] sm:$0xf] %v1469_v53  ;;  %1619 = vmatmul.mubr.bf16.vlgmr.msra.gmra.mrb[40].mxu0 %v1469_v53  ;;  %1660 = vmatmul.mubr.bf16.vlgmr.msra.gmra.mrb[40].mxu1 %v1469_v53 }
 0x3f3   : > { %1698 = vmatpush1.bf16.msra.mxu0 %v3525_v55  ;;  %1739 = vmatpush1.bf16.msra.mxu1 %v3528_v0 }
 0x3f4   : > { %1699 = vmatprep.subr.bf16.mxu0 %v3531_v63  ;;  %1740 = vmatprep.subr.bf16.mxu1 %v3534_v46  ;;  %v2396_v46 = vld [vmem:[#allocation11 + $0x40] ss:$16 sps:$4 sm:$0xff]  }
 0x3f5   : > { %1729 = vmatprep.mubr.bf16.mxu0 %v3788_v3  ;;  %1770 = vmatprep.mubr.bf16.mxu1 %v3788_v3 }
 0x3f7   : > { %1700 = vmatpush1.bf16.msra.mxu0 %v3539_v58  ;;  %1741 = vmatpush1.bf16.msra.mxu1 %v3542_v2  ;;  %v2399_v58 = vld [vmem:[#allocation11 + $0x6c] ss:$16 sps:$4 sm:$0xff]  }
 0x3f8   : > { %v2357_v54 = vpop.eup %2356  ;;  %1701 = vmatprep.subr.bf16.mxu0 %v3545_v6  ;;  %1742 = vmatprep.subr.bf16.mxu1 %v2395_v20 }
 0x3f9   : > { %v1568_v55 = vmul.f32 0.5, %v2357_v54  ;;  %v2359_v0 = vpop.eup %2358 }
 0x3fa   : > { %v1569_v63 = vmul.f32 0.5, %v2359_v0  ;;  %v2361_v3 = vpop.eup %2360 }
 0x3fb   : > { %v1571_v21 = vadd.f32 0.5, %v1568_v55  ;;  %1702 = vmatpush1.bf16.msra.mxu0 %v2396_v46  ;;  %1743 = vmatpush1.bf16.msra.mxu1 %v2397_v22 }
 0x3fc   : > { %1703 = vmatprep.subr.bf16.mxu0 %v2398_v23  ;;  %1744 = vmatprep.subr.bf16.mxu1 %v2399_v58  ;;  %v1572_v2 = vadd.f32 0.5, %v1569_v63  ;;  %v3807_v23 = vld [vmem:[#allocation42_spill] sm:$0xff] }
 0x3fd   : > { %v1576_v24 = vmul.f32 %v2361_v3, %v1571_v21 }
 0x3fe   : > { %v1575_v6 = vmul.f32 %v1572_v2, %v3507_v29  ;;  %v2363_v29 = vpop.eup %2362  ;;  %v3808_v2 = vld [vmem:[#allocation43_spill] sm:$0xff] }
 0x3ff   : > { %1704 = vmatpush1.bf16.msra.mxu0 %v2400_v25  ;;  %1745 = vmatpush1.bf16.msra.mxu1 %v2401_v26  ;;  %v1570_v37 = vmul.f32 0.5, %v2363_v29  ;;  %v3809_v26 = vld [vmem:[#allocation44_spill] sm:$0xff] }
 0x400   : > { %1705 = vmatprep.subr.bf16.mxu0 %v2402_v27  ;;  %1746 = vmatprep.subr.bf16.mxu1 %v2403_v28  ;;  %v3594_v30 = vadd.f32 %v1576_v24, %v1575_v6  ;;  %v3810_v28 = vld [vmem:[#allocation45_spill] sm:$0xff] }
 0x401   : > { %v1573_v43 = vadd.f32 0.5, %v1570_v37 }
 0x402   : > { %2364 = vtanh.f32 %v3594_v30 }
 0x403   : > { %1706 = vmatpush1.bf16.msra.mxu0 %v2404_v31  ;;  %1747 = vmatpush1.bf16.msra.mxu1 %v2405_v32 }
 0x404   : > { %1707 = vmatprep.subr.bf16.mxu0 %v2406_v33  ;;  %1748 = vmatprep.subr.bf16.mxu1 %v2407_v34 }
 0x407   : > { %1708 = vmatpush1.bf16.msra.mxu0 %v2408_v35  ;;  %1749 = vmatpush1.bf16.msra.mxu1 %v2409_v36 }
 0x408   : > { %1709 = vmatprep.subr.bf16.mxu0 %v2410_v39  ;;  %1750 = vmatprep.subr.bf16.mxu1 %v2411_v40 }
 0x40b   : > { %1710 = vmatpush1.bf16.msra.mxu0 %v2412_v41  ;;  %1751 = vmatpush1.bf16.msra.mxu1 %v2413_v42 }
 0x40c   : > { %1711 = vmatprep.subr.bf16.mxu0 %v2414_v45  ;;  %1752 = vmatprep.subr.bf16.mxu1 %v2415_v56  ;;  %v2365_v1 = vpop.eup %2364 }
 0x40d   : > { %v1579_v60 = vmul.f32 %v2365_v1, %v1573_v43 }
 0x40f   : > { %1712 = vmatpush1.bf16.msra.mxu0 %v2416_v62  ;;  %1753 = vmatpush1.bf16.msra.mxu1 %v2417_v50  ;;  %v1580_v38 = vpack.c.bf16 %v1579_v60, %v1579_v60 }
 0x411   : > { %2093 = vst [vmem:[%s3096_s2 + $0x14] sm:$0xf] %v1580_v38 }
 0x412   : > { %1730 = vmatmul.mubr.bf16.vlgmr.msra.gmra.mrb[44].mxu0 %v1580_v38  ;;  %1771 = vmatmul.mubr.bf16.vlgmr.msra.gmra.mrb[44].mxu1 %v1580_v38 }
 0x4c5   : > { %v1620_v4 = vpop.f32.mrb[40].mxu0  ;;  %v1661_v49 = vpop.f32.mrb[40].mxu1 }
 0x4c6   : > { %v1668_v11 = vadd.f32 %v1620_v4, %v3803_v10  ;;  %v1670_v7 = vadd.f32 %v1661_v49, %v3804_v47  ;;  %v1622_v57 = vpop.f32.mrb[41].mxu0  ;;  %v1663_v9 = vpop.f32.mrb[41].mxu1 }
 0x4c7   : > { %v1669_v13 = vadd.f32 %v1622_v57, %v3805_v12  ;;  %v1671_v14 = vadd.f32 %v1663_v9, %v3806_v44  ;;  %v1624_v15 = vpop.f32.mrb[42].mxu0  ;;  %v1665_v8 = vpop.f32.mrb[42].mxu1 }
 0x4c8   : > { %v1672_v16 = vmul.f32 0.5, %v1668_v11  ;;  %v1625_v17 = vpop.f32.mrb[43].mxu0  ;;  %v1666_v19 = vpop.f32.mrb[43].mxu1  ;;  %v1674_v59 = vmul.f32 0.5, %v1670_v7 }
 0x4c9   : > { %v1673_v18 = vmul.f32 0.5, %v1669_v13 }
 0x4ca   : > { %2366 = vtanh.f32 %v1672_v16 }
 0x4cb   : > { %2368 = vtanh.f32 %v1673_v18 }
 0x4cc   : > { %2370 = vtanh.f32 %v1671_v14 }
 0x4cd   : > { %2372 = vtanh.f32 %v1674_v59 }
 0x4d4   : > { %v2367_v48 = vpop.eup %2366 }
 0x4d5   : > { %v1678_v5 = vmul.f32 0.5, %v2367_v48  ;;  %v2369_v51 = vpop.eup %2368 }
 0x4d6   : > { %v1679_v52 = vmul.f32 0.5, %v2369_v51  ;;  %v2371_v54 = vpop.eup %2370 }
 0x4d7   : > { %v1681_v53 = vadd.f32 0.5, %v1678_v5  ;;  %v2373_v63 = vpop.eup %2372 }
 0x4d8   : > { %v1682_v20 = vadd.f32 0.5, %v1679_v52  ;;  %v1680_v46 = vmul.f32 0.5, %v2373_v63 }
 0x4d9   : > { %v1686_v55 = vmul.f32 %v2371_v54, %v1681_v53 }
 0x4da   : > { %v1685_v0 = vmul.f32 %v1682_v20, %v3576_v61  ;;  %v1683_v33 = vadd.f32 0.5, %v1680_v46 }
 0x4dc   : > { %v1687_v21 = vadd.f32 %v1686_v55, %v1685_v0 }
 0x4de   : > { %2374 = vtanh.f32 %v1687_v21  ;;  %1804 = vst [vmem:[#allocation17] sm:$0xff] %v1687_v21 }
 0x4e5   : > { %v1731_v22 = vpop.f32.mrb[44].mxu0  ;;  %v1772_v3 = vpop.f32.mrb[44].mxu1 }
 0x4e6   : > { %v1779_v58 = vadd.f32 %v1731_v22, %v3807_v23  ;;  %v1781_v24 = vadd.f32 %v1772_v3, %v3808_v2  ;;  %v1733_v6 = vpop.f32.mrb[45].mxu0  ;;  %v1774_v25 = vpop.f32.mrb[45].mxu1 }
 0x4e7   : > { %v1780_v27 = vadd.f32 %v1733_v6, %v3809_v26  ;;  %v1782_v31 = vadd.f32 %v1774_v25, %v3810_v28  ;;  %v1735_v32 = vpop.f32.mrb[46].mxu0  ;;  %v1776_v61 = vpop.f32.mrb[46].mxu1 }
 0x4e8   : > { %v1783_v34 = vmul.f32 0.5, %v1779_v58  ;;  %v1736_v29 = vpop.f32.mrb[47].mxu0  ;;  %v1777_v35 = vpop.f32.mrb[47].mxu1  ;;  %v1785_v41 = vmul.f32 0.5, %v1781_v24 }
 0x4e9   : > { %v2375_v36 = vpop.eup %2374  ;;  %v1784_v37 = vmul.f32 0.5, %v1780_v27 }
 0x4ea   : > { %2376 = vtanh.f32 %v1783_v34  ;;  %v1689_v39 = vmul.f32 %v2375_v36, %v1683_v33 }
 0x4eb   : > { %2378 = vtanh.f32 %v1784_v37 }
 0x4ec   : > { %v1690_v40 = vpack.c.bf16 %v1689_v39, %v1689_v39  ;;  %1803 = vst [vmem:[#allocation15] sm:$0xff] %v1689_v39  ;;  %2380 = vtanh.f32 %v1782_v31 }
 0x4ed   : > { %2382 = vtanh.f32 %v1785_v41 }
 0x4ee   : > { %2094 = vst [vmem:[%s3096_s2 + $0x18] sm:$0xf] %v1690_v40 }
 0x4f4   : > { %v2377_v42 = vpop.eup %2376 }
 0x4f5   : > { %v1789_v43 = vmul.f32 0.5, %v2377_v42  ;;  %v2379_v45 = vpop.eup %2378 }
 0x4f6   : > { %v1790_v1 = vmul.f32 0.5, %v2379_v45  ;;  %v2381_v60 = vpop.eup %2380 }
 0x4f7   : > { %v1792_v56 = vadd.f32 0.5, %v1789_v43  ;;  %v2383_v49 = vpop.eup %2382 }
 0x4f8   : > { %v1793_v62 = vadd.f32 0.5, %v1790_v1  ;;  %v1791_v10 = vmul.f32 0.5, %v2383_v49 }
 0x4f9   : > { %v1797_v50 = vmul.f32 %v2381_v60, %v1792_v56 }
 0x4fa   : > { %v1796_v38 = vmul.f32 %v1793_v62, %v3594_v30  ;;  %v1794_v11 = vadd.f32 0.5, %v1791_v10 }
 0x4fc   : > { %v1798_v4 = vadd.f32 %v1797_v50, %v1796_v38 }
 0x4fe   : > { %2384 = vtanh.f32 %v1798_v4  ;;  %1806 = vst [vmem:[#allocation17 + $0x8] sm:$0xff] %v1798_v4 }
 0x508   : > { %v2385_v47 = vpop.eup %2384 }
 0x509   : > { %v1800_v30 = vmul.f32 %v2385_v47, %v1794_v11 }
 0x50b   : > { %v1801_v7 = vpack.c.bf16 %v1800_v30, %v1800_v30  ;;  %1805 = vst [vmem:[#allocation15 + $0x8] sm:$0xff] %v1800_v30 }
 0x50c   : > { %2601 = shalt.err (!%p2598_p1)
}
 0x50d   : > { %s2602_s8 = scalar_lea.hbm %s3727_s7, 256 }
 0x50e   : > { %p2603_p12 = scmp.ne.s32.totalorder %s3727_s7, %s2602_s8  ;;  %p2608_p5 = scmp.lt.u32.totalorder %s2602_s8, %s3727_s7 }
 0x510   : > { %p2604_p13 = pnand %p2603_p12, %p3811_p10 }
 0x512   : > { %p2605_p2 = pneg %p2604_p13 }
 0x514   : > { %p2610_p0 = pnand %p2608_p5, %p2605_p2 }
 0x516   : > { %2613 = shalt.err (!%p2610_p0)
}
 0x517   : > { %s2755_s26 = smov 128   ;;  %s2756_s21 = smov 8   ;;  %2095 = vst [vmem:[%s3096_s2 + $0x1c] sm:$0xf] %v1801_v7 }
 0x518   : > { %2134 = dma.vmem_to_hbm [thread:$0]  (%p3811_p10), %s3609_s13, 256, %s3727_s7, [#allocation16], %s2755_s26, %s2755_s26, %s2756_s21  }
 0x519   : > { %s2614_s12 = scalar_lea.vmem %s3620_s16, 256  ;;  %p2621_p3 = scmp.lt.s32.totalorder %s3620_s16, %s3620_s16 }
 0x51a   : > { %p2615_p6 = scmp.ne.s32.totalorder %s3620_s16, %s2614_s12  ;;  %p2622_p4 = scmp.lt.s32.totalorder %s2614_s12, %s2614_s12 }
 0x51c   : > { %p2616_p7 = pnand %p2615_p6, %p3811_p10  ;;  %p2623_p9 = por %p2622_p4, %p2621_p3 }
 0x51e   : > { %p2617_p11 = pneg %p2616_p7 }
 0x520   : > { %p2624_p8 = pnand %p2623_p9, %p2617_p11 }
 0x522   : > { %2627 = shalt.err (!%p2624_p8)
}
 0x523   : > { %s3812_s25 = sld [smem:[#allocation49_spill]] }
 0x529   : > { %s2628_s20 = scalar_lea.hbm %s3812_s25, 256 }
 0x52a   : > { %p2629_p1 = scmp.ne.s32.totalorder %s3812_s25, %s2628_s20  ;;  %p2634_p2 = scmp.lt.u32.totalorder %s2628_s20, %s3812_s25 }
 0x52c   : > { %p2630_p12 = pnand %p2629_p1, %p3811_p10 }
 0x52e   : > { %p2631_p13 = pneg %p2630_p12 }
 0x530   : > { %p2636_p5 = pnand %p2634_p2, %p2631_p13 }
 0x532   : > { %2639 = shalt.err (!%p2636_p5)
}
 0x533   : > { %2136 = dma.vmem_to_hbm [thread:$0]  (%p3811_p10), %s3620_s16, 256, %s3812_s25, [#allocation16], %s2755_s26, %s2755_s26, %s2756_s21  }
 0x534   : > { %s1808_s0 = scalar_lea.sflag [#allocation5], %s3074_s24  ;;  %s2640_s8 = scalar_lea.vmem %s3618_s17, 512 }
 0x535   : > { %p2641_p0 = scmp.ne.s32.totalorder %s3618_s17, %s2640_s8  ;;  %p3813_p6 = scmp.ne.s32.totalorder %s3760_s15, 0 }
 0x536   : > { %s2757_s22 = smov [#allocation14]  }
 0x537   : > { %p2642_p7 = pnand %p2641_p0, %p3813_p6  ;;  %s2644_s20 = sshll.u32 %s2757_s22, 4  ;;  %s2645_s20 = int_to_ptr.vmem [resolvable:$false] %s2644_s20 }
 0x538   : > { %s2646_s30 = scalar_lea.vmem %s2645_s20, 1024  ;;  %p2647_p3 = scmp.lt.s32.totalorder %s3618_s17, %s2645_s20 }
 0x539   : > { %p2643_p11 = pneg %p2642_p7  ;;  %p2648_p4 = scmp.lt.s32.totalorder %s2646_s30, %s2640_s8 }
 0x53b   : > { %p2649_p9 = por %p2648_p4, %p2647_p3 }
 0x53d   : > { %p2650_p8 = pnand %p2649_p9, %p2643_p11 }
 0x53f   : > { %2653 = shalt.err (!%p2650_p8)
}
 0x540   : > { %s2654_s16 = scalar_lea.hbm %s3616_s19, 512  ;;  %s2658_s2 = scalar_lea.hbm %s3726_s6, 1024 }
 0x541   : > { %p2655_p1 = scmp.ne.s32.totalorder %s3616_s19, %s2654_s16  ;;  %p2659_p2 = scmp.lt.u32.totalorder %s3616_s19, %s3726_s6 }
 0x542   : > { %p2660_p5 = scmp.lt.u32.totalorder %s2658_s2, %s2654_s16  ;;  %p2662_p7 = scmp.lt.u32.totalorder %s2654_s16, %s3616_s19 }
 0x543   : > { %p2656_p12 = pnand %p2655_p1, %p3813_p6 }
 0x544   : > { %p2661_p0 = por %p2660_p5, %p2659_p2 }
 0x545   : > { %p2657_p13 = pneg %p2656_p12 }
 0x546   : > { %p2663_p11 = por %p2662_p7, %p2661_p0 }
 0x548   : > { %p2664_p3 = pnand %p2663_p11, %p2657_p13 }
 0x54a   : > { %2667 = shalt.err (!%p2664_p3)
}
 0x54b   : > { %s2758_s12 = smov 64   ;;  %s2759_s8 = smov 4  }
 0x54c   : > { %2132 = dma.vmem_to_hbm [thread:$0]  (%p3813_p6), %s3618_s17, 512, %s3616_s19, %s1808_s0, %s2758_s12, %s2758_s12, %s2759_s8  }
 0x54d   : > { %2709 = dma.done.wait (%p3811_p10), [#allocation16], 512  }
 0x54e   : > { %2711 = vsyncadd (%p3811_p10), [#allocation16], 4294966784 }
 0x54f PF: > { %s1879_s22 = sand.u32 1, %s2718_s27   ;;  %p3814_p4 = scmp.ne.s32.totalorder %s3761_s18, 0 }
 0x550   : > { %p3815_p9 = scmp.ge.s32.totalorder %s2738_s10, 2  ;;  %s1880_s20 = scalar_lea.sflag [#allocation5], %s1879_s22 }
 0x552   : > { %p2163_p8 = pnand %p3815_p9, %p3814_p4 }
 0x554   : > { %2713 = dma.done.wait (!%p2163_p8), %s1880_s20, 512  }
 0x555   : > { %2715 = vsyncadd (!%p2163_p8), %s1880_s20, 4294966784  ;;  %s29_s10 = sadd.s32 1, %s2738_s10   ;;  %s3816_s27 = smov %s2722_s28 }
 0x556   : > { %p26_p1 = scmp.ge.s32.totalorder %s29_s10, 4   ;;  %s3817_s28 = smov %s2726_s29 }
 0x557   : > { %s3818_s29 = smov %s3022_s11  ;;  %s3819_s30 = smov %s2734_s9 }
 0x558   : > { %s3820_s9 = smov %s3822_s1  ;;  %28 = sbr.rel (!%p26_p1) target bundleno = 15 (0xf), region = 136 }
 0x55f   :  { %1885 = vsyncpa [#allocation4], 1 }
 0x560   :  { %1887 = vsyncpa [#allocation4 + $0x1], 1 }
 0x561   :  { %1888 = vsyncpa [#allocation7], 1 }
 0x562   :  { %1889 = vsyncpa [#allocation10], 1 }
 0x563   :  { %1890 = vsyncpa [#allocation13], 1 }
 0x564   :  { %1891 = vsyncpa [#allocation5], 1 }
 0x565   :  { %1893 = vsyncpa [#allocation5 + $0x1], 1 }
 0x566   :  { %1894 = vsyncpa [#allocation16], 1 }

</bundles_post_ra>
